<compile_context>
chip_gen: v7x
topology: tpu7x:2x2x1
jax: 0.10.0
libtpu: 0.0.40
codegen_flags: <defaults>
</compile_context>

<pallas_src>
import jax
import jax.numpy as jnp
from jax.experimental import pallas as pl
from jax.experimental.pallas import tpu as pltpu

EPS = 1e-5
LANE = 128


def _round_up(n, m):
    return ((n + m - 1) // m) * m


def _vmem_limit_bytes():
    """Per-generation VMEM request: ~3/4 of physical, capped at 96 MiB."""
    try:
        cap = int(pltpu.get_tpu_info().vmem_capacity_bytes)
    except Exception:
        cap = 64 * 1024 * 1024          # assume the smallest (v7x) if query fails
    return int(min(cap * 3 // 4, 96 * 1024 * 1024))


# ----------------------------- Pallas kernel --------------------------------

def _make_conv_kernel(*, stride, Ho, Wo, cin_p, cout_p, xs_cp, xs_off,
                      shortcut, pad_output):
    """3x3 conv (3 K-folded GEMMs) + folded-BN affine [+ residual] + ReLU."""
    nphase = stride * stride
    M = Ho * Wo
    K3 = 3 * cin_p

    def kernel(*refs):
        ph_refs = refs[:nphase]
        w_ref = refs[nphase]                 # (3, 3*cin_p, cout_p) bf16
        sc_ref = refs[nphase + 1]            # (1, cout_p) f32
        bi_ref = refs[nphase + 2]            # (1, cout_p) f32
        if shortcut == "proj":
            xs_ref, ws_ref, scs_ref, bis_ref = refs[nphase + 3:nphase + 7]
        elif shortcut == "identity":
            xs_ref = refs[nphase + 3]
        o_ref = refs[-1]

        def row_input(dy):
            # Concatenate the three dx taps of this dy along channels so the
            # GEMM contraction depth is 3*cin_p (fills a >=256-deep MXU pass).
            wins = []
            for dx in range(3):
                ph = ph_refs[(dy % stride) * stride + (dx % stride)]
                ay, ax = dy // stride, dx // stride
                wins.append(
                    ph[0, pl.ds(ay, Ho), pl.ds(ax, Wo), :].reshape(M, cin_p))
            return jnp.concatenate(wins, axis=-1)          # (M, 3*cin_p)

        # 3x3 conv as 3 K-folded GEMMs; the first dot initializes the
        # accumulator (no zero-fill), the next two chain into it.
        acc = jnp.dot(row_input(0), w_ref[0], preferred_element_type=jnp.float32)
        acc = acc + jnp.dot(row_input(1), w_ref[1],
                            preferred_element_type=jnp.float32)
        acc = acc + jnp.dot(row_input(2), w_ref[2],
                            preferred_element_type=jnp.float32)

        if shortcut == "proj":
            xs = xs_ref[0, pl.ds(xs_off, Ho), pl.ds(xs_off, Wo), :]
            r = jnp.dot(xs.reshape(M, xs_cp), ws_ref[...],
                        preferred_element_type=jnp.float32)

        # Vector epilogue (after all MXU work): folded BN, residual, ReLU (f32).
        y = acc * sc_ref[...] + bi_ref[...]
        if shortcut == "proj":
            y = y + (r * scs_ref[...] + bis_ref[...])
        elif shortcut == "identity":
            xs = xs_ref[0, pl.ds(xs_off, Ho), pl.ds(xs_off, Wo), :]
            y = y + xs.reshape(M, cout_p)        # residual stays f32
        y = jnp.maximum(y, 0.0).reshape(Ho, Wo, cout_p).astype(o_ref.dtype)

        if pad_output:
            # Build the zero W halo in VMEM, store the Ho interior rows densely
            # at row offset 1 (full W extent), plus two small zero halo rows.
            yw = jnp.pad(y, ((0, 0), (1, 1), (0, 0)))       # (Ho, Wo+2, cout_p)
            o_ref[0, pl.ds(1, Ho), :, :] = yw
            zrow = jnp.zeros((1, Wo + 2, cout_p), o_ref.dtype)
            o_ref[0, pl.ds(0, 1), :, :] = zrow
            o_ref[0, pl.ds(Ho + 1, 1), :, :] = zrow
        else:
            o_ref[0] = y

    return kernel


# ----------------------------- pallas_call wrapper ---------------------------

def _conv_block(slabs, w3, sc, bi, *, stride, Ho, Wo, cout_p,
                shortcut=None, shortcut_ops=(), shortcut_off=0,
                pad_output=False, out_dtype=jnp.float32):
    N, Hs, Ws, cin_p = slabs[0].shape
    xs_cp = shortcut_ops[0].shape[-1] if shortcut else None

    kernel = _make_conv_kernel(stride=stride, Ho=Ho, Wo=Wo, cin_p=cin_p,
                               cout_p=cout_p, xs_cp=xs_cp, xs_off=shortcut_off,
                               shortcut=shortcut, pad_output=pad_output)

    in_specs = [pl.BlockSpec((1, Hs, Ws, cin_p), lambda n: (n, 0, 0, 0))
                for _ in slabs]
    in_specs += [
        pl.BlockSpec((3, 3 * cin_p, cout_p), lambda n: (0, 0, 0)),  # folded W
        pl.BlockSpec((1, cout_p), lambda n: (0, 0)),                # bn scale
        pl.BlockSpec((1, cout_p), lambda n: (0, 0)),                # bn bias
    ]
    args = list(slabs) + [w3, sc, bi]

    if shortcut == "proj":
        xs, ws, scs, bis = shortcut_ops
        _, Hxs, Wxs, _ = xs.shape
        in_specs += [
            pl.BlockSpec((1, Hxs, Wxs, xs_cp), lambda n: (n, 0, 0, 0)),
            pl.BlockSpec((xs_cp, cout_p), lambda n: (0, 0)),
            pl.BlockSpec((1, cout_p), lambda n: (0, 0)),
            pl.BlockSpec((1, cout_p), lambda n: (0, 0)),
        ]
        args += [xs, ws, scs, bis]
    elif shortcut == "identity":
        (xs,) = shortcut_ops
        _, Hxs, Wxs, _ = xs.shape
        in_specs += [pl.BlockSpec((1, Hxs, Wxs, xs_cp), lambda n: (n, 0, 0, 0))]
        args += [xs]

    Hout = Ho + 2 if pad_output else Ho
    Wout = Wo + 2 if pad_output else Wo

    return pl.pallas_call(
        kernel,
        out_shape=jax.ShapeDtypeStruct((N, Hout, Wout, cout_p), out_dtype),
        grid=(N,),
        in_specs=in_specs,
        out_specs=pl.BlockSpec((1, Hout, Wout, cout_p), lambda n: (n, 0, 0, 0)),
        compiler_params=pltpu.CompilerParams(
            dimension_semantics=("parallel",),
            vmem_limit_bytes=_vmem_limit_bytes(),
        ),
    )(*args)


# ----------------------------- glue (plain JAX) ------------------------------

def _fold_bn(gamma, beta, mean, var, cp):
    scale = (gamma * jax.lax.rsqrt(var + EPS)).astype(jnp.float32)
    bias = (beta - mean * scale).astype(jnp.float32)
    pad = cp - scale.shape[0]
    return (jnp.pad(scale, (0, pad)).reshape(1, cp),
            jnp.pad(bias, (0, pad)).reshape(1, cp))


def _prep_w3x3(w_oihw, cin_p, cout_p):
    co, ci, kh, kw = w_oihw.shape
    w = jnp.transpose(w_oihw, (2, 3, 1, 0))                    # (kh, kw, ci, co)
    w = jnp.pad(w, ((0, 0), (0, 0), (0, cin_p - ci), (0, cout_p - co)))
    # Fold kw into the contraction axis so the per-dy GEMM has depth 3*cin_p;
    # layout matches the in-kernel concat over dx (dx-major, channel-minor).
    return w.reshape(kh, kw * cin_p, cout_p).astype(jnp.bfloat16)


def _phase_slabs(xp, Ho, Wo, stride):
    """Split an already (spatially + channel) padded NHWC slab into stride^2
    dense phase slabs (strided slices; total bytes == padded input, no 9x
    im2col blow-up).  For stride == 1 the slab IS the padded array (no copy)."""
    s = stride
    if s == 1:
        return [xp]
    amax = 2 // s
    slabs = []
    for py in range(s):
        for px in range(s):
            slabs.append(xp[:, py:py + s * (Ho - 1 + amax) + 1:s,
                             px:px + s * (Wo - 1 + amax) + 1:s, :])
    return slabs


def basic_block_forward(x_nchw, params, stride):
    x = jnp.transpose(x_nchw, (0, 2, 3, 1)).astype(jnp.float32)   # NHWC f32
    N, H, W, Cin = x.shape
    planes = params["conv1_w"].shape[0]
    cin_p = _round_up(Cin, LANE)
    cp = _round_up(planes, LANE)

    s = stride
    Ho = (H + 2 - 3) // s + 1
    Wo = (W + 2 - 3) // s + 1

    # One combined pad (spatial halo + channel lanes); keep an f32 copy for the
    # identity residual and a bf16 copy for the MXU operands.
    amax = 2 // s
    EH = (s - 1) + s * (Ho - 1 + amax) + 1
    EW = (s - 1) + s * (Wo - 1 + amax) + 1
    xp32 = jnp.pad(x, ((0, 0), (1, EH - H - 1), (1, EW - W - 1),
                       (0, cin_p - Cin)))
    xp_bf = xp32.astype(jnp.bfloat16)
    slabs1 = _phase_slabs(xp_bf, Ho, Wo, s)

    # --- conv1 (3x3, stride) + bn1 + relu -> spatially pre-padded bf16 slab ---
    w1 = _prep_w3x3(params["conv1_w"], cin_p, cp)
    sc1, bi1 = _fold_bn(params["bn1_g"], params["bn1_b"],
                        params["bn1_m"], params["bn1_v"], cp)
    y1_pad = _conv_block(slabs1, w1, sc1, bi1, stride=s, Ho=Ho, Wo=Wo,
                         cout_p=cp, pad_output=True, out_dtype=jnp.bfloat16)
    # y1_pad: [N, Ho+2, Wo+2, cp] bf16 with zero halo -> conv2 reads it directly.

    # --- conv2 (3x3, stride 1) + bn2 + shortcut + relu (single fused call) ---
    w2 = _prep_w3x3(params["conv2_w"], cp, cp)
    sc2, bi2 = _fold_bn(params["bn2_g"], params["bn2_b"],
                        params["bn2_m"], params["bn2_v"], cp)

    if s != 1 or Cin != planes:
        # Projection shortcut: reuse the already-materialized phase slab of x
        # that holds rows/cols {0, s, 2s, ...} (no separate xs copy in HBM).
        ph = 1 % s
        xs_slab = slabs1[ph * s + ph]
        xs_off = (1 - ph) // s
        ws = jnp.pad(jnp.transpose(params["sc_w"][:, :, 0, 0], (1, 0)),
                     ((0, cin_p - Cin), (0, cp - planes))).astype(jnp.bfloat16)
        scs, bis = _fold_bn(params["sc_g"], params["sc_b"],
                            params["sc_m"], params["sc_v"], cp)
        out = _conv_block([y1_pad], w2, sc2, bi2, stride=1, Ho=Ho, Wo=Wo,
                          cout_p=cp, shortcut="proj",
                          shortcut_ops=(xs_slab, ws, scs, bis),
                          shortcut_off=xs_off, out_dtype=jnp.float32)
    else:
        # Identity shortcut fast path: residual read from the f32 padded input
        # (interior window) -- no extra HBM copy, no bf16 quantization.
        assert Ho == H and Wo == W and cin_p == cp
        out = _conv_block([y1_pad], w2, sc2, bi2, stride=1, Ho=Ho, Wo=Wo,
                          cout_p=cp, shortcut="identity",
                          shortcut_ops=(xp32,), shortcut_off=1,
                          out_dtype=jnp.float32)

    # TODO(synk): when stacking blocks, keep channel-padded bf16 NHWC between
    # blocks and skip this slice/transpose (convert only at network boundaries).
    out = out[:, :, :, :planes]
    return jnp.transpose(out, (0, 3, 1, 2))       # back to NCHW


# ----------------------------- reference (plain JAX) -------------------------

def _ref_forward(x_nchw, params, stride):
    x = jnp.transpose(x_nchw, (0, 2, 3, 1)).astype(jnp.float32)

    def conv(x, w_oihw, s, pad):
        w_hwio = jnp.transpose(w_oihw, (2, 3, 1, 0))
        return jax.lax.conv_general_dilated(
            x, w_hwio, (s, s), [(pad, pad), (pad, pad)],
            dimension_numbers=("NHWC", "HWIO", "NHWC"),
            precision=jax.lax.Precision.HIGHEST)

    def bn(x, g, b, m, v):
        return (x - m) * jax.lax.rsqrt(v + EPS) * g + b

    out = jax.nn.relu(bn(conv(x, params["conv1_w"], stride, 1),
                         params["bn1_g"], params["bn1_b"],
                         params["bn1_m"], params["bn1_v"]))
    out = bn(conv(out, params["conv2_w"], 1, 1),
             params["bn2_g"], params["bn2_b"], params["bn2_m"], params["bn2_v"])
    if stride != 1 or x.shape[-1] != params["conv1_w"].shape[0]:
        sc = bn(conv(x, params["sc_w"], stride, 0),
                params["sc_g"], params["sc_b"], params["sc_m"], params["sc_v"])
    else:
        sc = x
    out = jax.nn.relu(out + sc)
    return jnp.transpose(out, (0, 3, 1, 2))


# ----------------------------- params / main ---------------------------------

def _init_params(key, in_planes, planes, stride):
    ks = jax.random.split(key, 12)
    p = {
        "conv1_w": 0.1 * jax.random.normal(ks[0], (planes, in_planes, 3, 3), jnp.float32),
        "bn1_g": jax.random.uniform(ks[1], (planes,), jnp.float32, 0.5, 1.5),
        "bn1_b": 0.1 * jax.random.normal(ks[2], (planes,), jnp.float32),
        "bn1_m": 0.1 * jax.random.normal(ks[3], (planes,), jnp.float32),
        "bn1_v": jax.random.uniform(ks[4], (planes,), jnp.float32, 0.5, 1.5),
        "conv2_w": 0.1 * jax.random.normal(ks[5], (planes, planes, 3, 3), jnp.float32),
        "bn2_g": jax.random.uniform(ks[6], (planes,), jnp.float32, 0.5, 1.5),
        "bn2_b": 0.1 * jax.random.normal(ks[7], (planes,), jnp.float32),
        "bn2_m": 0.1 * jax.random.normal(ks[8], (planes,), jnp.float32),
        "bn2_v": jax.random.uniform(ks[9], (planes,), jnp.float32, 0.5, 1.5),
    }
    if stride != 1 or in_planes != planes:
        ks2 = jax.random.split(ks[10], 5)
        p.update({
            "sc_w": 0.1 * jax.random.normal(ks2[0], (planes, in_planes, 1, 1), jnp.float32),
            "sc_g": jax.random.uniform(ks2[1], (planes,), jnp.float32, 0.5, 1.5),
            "sc_b": 0.1 * jax.random.normal(ks2[2], (planes,), jnp.float32),
            "sc_m": 0.1 * jax.random.normal(ks2[3], (planes,), jnp.float32),
            "sc_v": jax.random.uniform(ks2[4], (planes,), jnp.float32, 0.5, 1.5),
        })
    return p


if __name__ == "__main__":
    key = jax.random.PRNGKey(0)

    # Config 1: projection shortcut (stride 2, channel expansion).
    in_planes, planes, stride = 4, 8, 2
    N, H, W = 2, 16, 16
    k_x, k_p, key = jax.random.split(key, 3)
    x = jax.random.normal(k_x, (N, in_planes, H, W), jnp.float32)
    params = _init_params(k_p, in_planes, planes, stride)
    out = jax.block_until_ready(basic_block_forward(x, params, stride))
    ref = jax.block_until_ready(_ref_forward(x, params, stride))
    assert out.shape == ref.shape, (out.shape, ref.shape)
    # bf16 MXU operands (f32 accumulation) vs f32 HIGHEST-precision reference:
    # keep a documented loose tolerance.
    assert jnp.allclose(out, ref, rtol=3e-2, atol=3e-2), \
        float(jnp.max(jnp.abs(out - ref)))

    # Config 2: identity-shortcut fast path (stride 1, same planes).
    in_planes2, planes2, stride2 = 8, 8, 1
    k_x2, k_p2, key = jax.random.split(key, 3)
    x2 = jax.random.normal(k_x2, (N, in_planes2, H, W), jnp.float32)
    params2 = _init_params(k_p2, in_planes2, planes2, stride2)
    out2 = jax.block_until_ready(basic_block_forward(x2, params2, stride2))
    ref2 = jax.block_until_ready(_ref_forward(x2, params2, stride2))
    assert out2.shape == ref2.shape, (out2.shape, ref2.shape)
    assert jnp.allclose(out2, ref2, rtol=3e-2, atol=3e-2), \
        float(jnp.max(jnp.abs(out2 - ref2)))

    print("KERNEL_OK")
</pallas_src>

<mosaic_0001>
module attributes {stable_mosaic.version = 11 : i64} {
  func.func @kernel(%arg0: i32, %arg1: memref<1x9x9x128xbf16, #tpu.memory_space<vmem>>, %arg2: memref<1x9x9x128xbf16, #tpu.memory_space<vmem>>, %arg3: memref<1x9x9x128xbf16, #tpu.memory_space<vmem>>, %arg4: memref<1x9x9x128xbf16, #tpu.memory_space<vmem>>, %arg5: memref<3x384x128xbf16, #tpu.memory_space<vmem>>, %arg6: memref<1x128xf32, #tpu.memory_space<vmem>>, %arg7: memref<1x128xf32, #tpu.memory_space<vmem>>, %arg8: memref<1x10x10x128xbf16, #tpu.memory_space<vmem>>) attributes {dimension_semantics = [#tpu.dimension_semantics<parallel>], iteration_bounds = array<i64: 2>, scalar_prefetch = 0 : i64, scratch_operands = 0 : i64, tpu.core_type = #tpu.core_type<tc>, window_params = [{transform_indices = @transform_0, window_bounds = array<i64: 1, 9, 9, 128>}, {transform_indices = @transform_1, window_bounds = array<i64: 1, 9, 9, 128>}, {transform_indices = @transform_2, window_bounds = array<i64: 1, 9, 9, 128>}, {transform_indices = @transform_3, window_bounds = array<i64: 1, 9, 9, 128>}, {pipeline_mode = #tpu.pipeline_mode<synchronous>, transform_indices = @transform_4, window_bounds = array<i64: 3, 384, 128>}, {pipeline_mode = #tpu.pipeline_mode<synchronous>, transform_indices = @transform_5, window_bounds = array<i64: 1, 128>}, {pipeline_mode = #tpu.pipeline_mode<synchronous>, transform_indices = @transform_6, window_bounds = array<i64: 1, 128>}, {transform_indices = @transform_7, window_bounds = array<i64: 1, 10, 10, 128>}]} {
    %c0 = arith.constant 0 : index
    %c0_0 = arith.constant 0 : index
    %c0_1 = arith.constant 0 : index
    %c0_2 = arith.constant 0 : index
    %0 = vector.load %arg1[%c0, %c0_0, %c0_1, %c0_2] : memref<1x9x9x128xbf16, #tpu.memory_space<vmem>>, vector<1x8x8x128xbf16>
    %1 = vector.shape_cast %0 : vector<1x8x8x128xbf16> to vector<8x8x128xbf16>
    %2 = vector.shape_cast %1 : vector<8x8x128xbf16> to vector<64x128xbf16>
    %c0_3 = arith.constant 0 : index
    %c0_4 = arith.constant 0 : index
    %c0_5 = arith.constant 0 : index
    %c0_6 = arith.constant 0 : index
    %3 = vector.load %arg2[%c0_3, %c0_4, %c0_5, %c0_6] : memref<1x9x9x128xbf16, #tpu.memory_space<vmem>>, vector<1x8x8x128xbf16>
    %4 = vector.shape_cast %3 : vector<1x8x8x128xbf16> to vector<8x8x128xbf16>
    %5 = vector.shape_cast %4 : vector<8x8x128xbf16> to vector<64x128xbf16>
    %c0_7 = arith.constant 0 : index
    %c0_8 = arith.constant 0 : index
    %c1 = arith.constant 1 : index
    %c0_9 = arith.constant 0 : index
    %6 = vector.load %arg1[%c0_7, %c0_8, %c1, %c0_9] : memref<1x9x9x128xbf16, #tpu.memory_space<vmem>>, vector<1x8x8x128xbf16>
    %7 = vector.shape_cast %6 : vector<1x8x8x128xbf16> to vector<8x8x128xbf16>
    %8 = vector.shape_cast %7 : vector<8x8x128xbf16> to vector<64x128xbf16>
    %9 = tpu.concatenate %2, %5, %8 in 1 : vector<64x128xbf16>, vector<64x128xbf16>, vector<64x128xbf16> -> vector<64x384xbf16>
    %c0_10 = arith.constant 0 : index
    %c0_11 = arith.constant 0 : index
    %c0_12 = arith.constant 0 : index
    %10 = vector.load %arg5[%c0_10, %c0_11, %c0_12] : memref<3x384x128xbf16, #tpu.memory_space<vmem>>, vector<1x384x128xbf16>
    %11 = vector.shape_cast %10 : vector<1x384x128xbf16> to vector<384x128xbf16>
    %cst = arith.constant dense<0.000000e+00> : vector<64x128xf32>
    %12 = tpu.matmul %9, %11, %cst {dimension_numbers = #tpu.dot_dimension_numbers<[1], [0], [0], [1], [0, 0, 1, 1], [], []>} : vector<64x384xbf16>, vector<384x128xbf16>, vector<64x128xf32> -> vector<64x128xf32>
    %c0_13 = arith.constant 0 : index
    %c0_14 = arith.constant 0 : index
    %c0_15 = arith.constant 0 : index
    %c0_16 = arith.constant 0 : index
    %13 = vector.load %arg3[%c0_13, %c0_14, %c0_15, %c0_16] : memref<1x9x9x128xbf16, #tpu.memory_space<vmem>>, vector<1x8x8x128xbf16>
    %14 = vector.shape_cast %13 : vector<1x8x8x128xbf16> to vector<8x8x128xbf16>
    %15 = vector.shape_cast %14 : vector<8x8x128xbf16> to vector<64x128xbf16>
    %c0_17 = arith.constant 0 : index
    %c0_18 = arith.constant 0 : index
    %c0_19 = arith.constant 0 : index
    %c0_20 = arith.constant 0 : index
    %16 = vector.load %arg4[%c0_17, %c0_18, %c0_19, %c0_20] : memref<1x9x9x128xbf16, #tpu.memory_space<vmem>>, vector<1x8x8x128xbf16>
    %17 = vector.shape_cast %16 : vector<1x8x8x128xbf16> to vector<8x8x128xbf16>
    %18 = vector.shape_cast %17 : vector<8x8x128xbf16> to vector<64x128xbf16>
    %c0_21 = arith.constant 0 : index
    %c0_22 = arith.constant 0 : index
    %c1_23 = arith.constant 1 : index
    %c0_24 = arith.constant 0 : index
    %19 = vector.load %arg3[%c0_21, %c0_22, %c1_23, %c0_24] : memref<1x9x9x128xbf16, #tpu.memory_space<vmem>>, vector<1x8x8x128xbf16>
    %20 = vector.shape_cast %19 : vector<1x8x8x128xbf16> to vector<8x8x128xbf16>
    %21 = vector.shape_cast %20 : vector<8x8x128xbf16> to vector<64x128xbf16>
    %22 = tpu.concatenate %15, %18, %21 in 1 : vector<64x128xbf16>, vector<64x128xbf16>, vector<64x128xbf16> -> vector<64x384xbf16>
    %c1_25 = arith.constant 1 : index
    %c0_26 = arith.constant 0 : index
    %c0_27 = arith.constant 0 : index
    %23 = vector.load %arg5[%c1_25, %c0_26, %c0_27] : memref<3x384x128xbf16, #tpu.memory_space<vmem>>, vector<1x384x128xbf16>
    %24 = vector.shape_cast %23 : vector<1x384x128xbf16> to vector<384x128xbf16>
    %cst_28 = arith.constant dense<0.000000e+00> : vector<64x128xf32>
    %25 = tpu.matmul %22, %24, %cst_28 {dimension_numbers = #tpu.dot_dimension_numbers<[1], [0], [0], [1], [0, 0, 1, 1], [], []>} : vector<64x384xbf16>, vector<384x128xbf16>, vector<64x128xf32> -> vector<64x128xf32>
    %26 = arith.addf %12, %25 : vector<64x128xf32>
    %c0_29 = arith.constant 0 : index
    %c1_30 = arith.constant 1 : index
    %c0_31 = arith.constant 0 : index
    %c0_32 = arith.constant 0 : index
    %27 = vector.load %arg1[%c0_29, %c1_30, %c0_31, %c0_32] : memref<1x9x9x128xbf16, #tpu.memory_space<vmem>>, vector<1x8x8x128xbf16>
    %28 = vector.shape_cast %27 : vector<1x8x8x128xbf16> to vector<8x8x128xbf16>
    %29 = vector.shape_cast %28 : vector<8x8x128xbf16> to vector<64x128xbf16>
    %c0_33 = arith.constant 0 : index
    %c1_34 = arith.constant 1 : index
    %c0_35 = arith.constant 0 : index
    %c0_36 = arith.constant 0 : index
    %30 = vector.load %arg2[%c0_33, %c1_34, %c0_35, %c0_36] : memref<1x9x9x128xbf16, #tpu.memory_space<vmem>>, vector<1x8x8x128xbf16>
    %31 = vector.shape_cast %30 : vector<1x8x8x128xbf16> to vector<8x8x128xbf16>
    %32 = vector.shape_cast %31 : vector<8x8x128xbf16> to vector<64x128xbf16>
    %c0_37 = arith.constant 0 : index
    %c1_38 = arith.constant 1 : index
    %c1_39 = arith.constant 1 : index
    %c0_40 = arith.constant 0 : index
    %33 = vector.load %arg1[%c0_37, %c1_38, %c1_39, %c0_40] : memref<1x9x9x128xbf16, #tpu.memory_space<vmem>>, vector<1x8x8x128xbf16>
    %34 = vector.shape_cast %33 : vector<1x8x8x128xbf16> to vector<8x8x128xbf16>
    %35 = vector.shape_cast %34 : vector<8x8x128xbf16> to vector<64x128xbf16>
    %36 = tpu.concatenate %29, %32, %35 in 1 : vector<64x128xbf16>, vector<64x128xbf16>, vector<64x128xbf16> -> vector<64x384xbf16>
    %c2 = arith.constant 2 : index
    %c0_41 = arith.constant 0 : index
    %c0_42 = arith.constant 0 : index
    %37 = vector.load %arg5[%c2, %c0_41, %c0_42] : memref<3x384x128xbf16, #tpu.memory_space<vmem>>, vector<1x384x128xbf16>
    %38 = vector.shape_cast %37 : vector<1x384x128xbf16> to vector<384x128xbf16>
    %cst_43 = arith.constant dense<0.000000e+00> : vector<64x128xf32>
    %39 = tpu.matmul %36, %38, %cst_43 {dimension_numbers = #tpu.dot_dimension_numbers<[1], [0], [0], [1], [0, 0, 1, 1], [], []>} : vector<64x384xbf16>, vector<384x128xbf16>, vector<64x128xf32> -> vector<64x128xf32>
    %40 = arith.addf %26, %39 : vector<64x128xf32>
    %c0_44 = arith.constant 0 : index
    %c0_45 = arith.constant 0 : index
    %41 = vector.load %arg6[%c0_44, %c0_45] : memref<1x128xf32, #tpu.memory_space<vmem>>, vector<1x128xf32>
    %42 = vector.broadcast %41 : vector<1x128xf32> to vector<64x128xf32>
    %43 = arith.mulf %40, %42 : vector<64x128xf32>
    %c0_46 = arith.constant 0 : index
    %c0_47 = arith.constant 0 : index
    %44 = vector.load %arg7[%c0_46, %c0_47] : memref<1x128xf32, #tpu.memory_space<vmem>>, vector<1x128xf32>
    %45 = vector.broadcast %44 : vector<1x128xf32> to vector<64x128xf32>
    %46 = arith.addf %43, %45 : vector<64x128xf32>
    %cst_48 = arith.constant 0.000000e+00 : f32
    %47 = vector.broadcast %cst_48 : f32 to vector<64x128xf32>
    %48 = arith.maximumf %46, %47 : vector<64x128xf32>
    %49 = vector.shape_cast %48 : vector<64x128xf32> to vector<8x8x128xf32>
    %50 = arith.truncf %49 : vector<8x8x128xf32> to vector<8x8x128xbf16>
    %c0_i32 = arith.constant 0 : i32
    %51 = arith.sitofp %c0_i32 : i32 to bf16
    %52 = vector.broadcast %51 : bf16 to vector<8x1x128xbf16>
    %53 = tpu.concatenate %52, %50 in 1 : vector<8x1x128xbf16>, vector<8x8x128xbf16> -> vector<8x9x128xbf16>
    %54 = vector.broadcast %51 : bf16 to vector<8x1x128xbf16>
    %55 = tpu.concatenate %53, %54 in 1 : vector<8x9x128xbf16>, vector<8x1x128xbf16> -> vector<8x10x128xbf16>
    %c0_49 = arith.constant 0 : index
    %c1_50 = arith.constant 1 : index
    %c0_51 = arith.constant 0 : index
    %c0_52 = arith.constant 0 : index
    %56 = vector.load %arg8[%c0_49, %c1_50, %c0_51, %c0_52] : memref<1x10x10x128xbf16, #tpu.memory_space<vmem>>, vector<1x8x10x128xbf16>
    %57 = vector.shape_cast %56 : vector<1x8x10x128xbf16> to vector<8x10x128xbf16>
    %58 = vector.shape_cast %55 : vector<8x10x128xbf16> to vector<1x8x10x128xbf16>
    tpu.vector_store %arg8[%c0_49, %c1_50, %c0_51, %c0_52], %58 {strides = array<i32>} : memref<1x10x10x128xbf16, #tpu.memory_space<vmem>>, vector<1x8x10x128xbf16>,
    %cst_53 = arith.constant 0.000000e+00 : bf16
    %59 = vector.broadcast %cst_53 : bf16 to vector<1x10x128xbf16>
    %c0_54 = arith.constant 0 : index
    %c0_55 = arith.constant 0 : index
    %c0_56 = arith.constant 0 : index
    %c0_57 = arith.constant 0 : index
    %60 = vector.load %arg8[%c0_54, %c0_55, %c0_56, %c0_57] : memref<1x10x10x128xbf16, #tpu.memory_space<vmem>>, vector<1x1x10x128xbf16>
    %61 = vector.shape_cast %60 : vector<1x1x10x128xbf16> to vector<1x10x128xbf16>
    %62 = vector.shape_cast %59 : vector<1x10x128xbf16> to vector<1x1x10x128xbf16>
    tpu.vector_store %arg8[%c0_54, %c0_55, %c0_56, %c0_57], %62 {strides = array<i32>} : memref<1x10x10x128xbf16, #tpu.memory_space<vmem>>, vector<1x1x10x128xbf16>,
    %c0_58 = arith.constant 0 : index
    %c9 = arith.constant 9 : index
    %c0_59 = arith.constant 0 : index
    %c0_60 = arith.constant 0 : index
    %63 = vector.load %arg8[%c0_58, %c9, %c0_59, %c0_60] : memref<1x10x10x128xbf16, #tpu.memory_space<vmem>>, vector<1x1x10x128xbf16>
    %64 = vector.shape_cast %63 : vector<1x1x10x128xbf16> to vector<1x10x128xbf16>
    %65 = vector.shape_cast %59 : vector<1x10x128xbf16> to vector<1x1x10x128xbf16>
    tpu.vector_store %arg8[%c0_58, %c9, %c0_59, %c0_60], %65 {strides = array<i32>} : memref<1x10x10x128xbf16, #tpu.memory_space<vmem>>, vector<1x1x10x128xbf16>,
    return
  }
  func.func @transform_0(%arg0: i32) -> (i32, i32, i32, i32) {
    %c0_i32 = arith.constant 0 : i32
    %c0_i32_0 = arith.constant 0 : i32
    %c0_i32_1 = arith.constant 0 : i32
    %c0_i32_2 = arith.constant 0 : i32
    return %arg0, %c0_i32, %c0_i32_0, %c0_i32_1 : i32, i32, i32, i32
  }
  func.func @transform_1(%arg0: i32) -> (i32, i32, i32, i32) {
    %c0_i32 = arith.constant 0 : i32
    %c0_i32_0 = arith.constant 0 : i32
    %c0_i32_1 = arith.constant 0 : i32
    %c0_i32_2 = arith.constant 0 : i32
    return %arg0, %c0_i32, %c0_i32_0, %c0_i32_1 : i32, i32, i32, i32
  }
  func.func @transform_2(%arg0: i32) -> (i32, i32, i32, i32) {
    %c0_i32 = arith.constant 0 : i32
    %c0_i32_0 = arith.constant 0 : i32
    %c0_i32_1 = arith.constant 0 : i32
    %c0_i32_2 = arith.constant 0 : i32
    return %arg0, %c0_i32, %c0_i32_0, %c0_i32_1 : i32, i32, i32, i32
  }
  func.func @transform_3(%arg0: i32) -> (i32, i32, i32, i32) {
    %c0_i32 = arith.constant 0 : i32
    %c0_i32_0 = arith.constant 0 : i32
    %c0_i32_1 = arith.constant 0 : i32
    %c0_i32_2 = arith.constant 0 : i32
    return %arg0, %c0_i32, %c0_i32_0, %c0_i32_1 : i32, i32, i32, i32
  }
  func.func @transform_4(%arg0: i32) -> (i32, i32, i32) {
    %c0_i32 = arith.constant 0 : i32
    %c0_i32_0 = arith.constant 0 : i32
    %c0_i32_1 = arith.constant 0 : i32
    %c0_i32_2 = arith.constant 0 : i32
    return %c0_i32, %c0_i32_0, %c0_i32_1 : i32, i32, i32
  }
  func.func @transform_5(%arg0: i32) -> (i32, i32) {
    %c0_i32 = arith.constant 0 : i32
    %c0_i32_0 = arith.constant 0 : i32
    %c0_i32_1 = arith.constant 0 : i32
    return %c0_i32, %c0_i32_0 : i32, i32
  }
  func.func @transform_6(%arg0: i32) -> (i32, i32) {
    %c0_i32 = arith.constant 0 : i32
    %c0_i32_0 = arith.constant 0 : i32
    %c0_i32_1 = arith.constant 0 : i32
    return %c0_i32, %c0_i32_0 : i32, i32
  }
  func.func @transform_7(%arg0: i32) -> (i32, i32, i32, i32) {
    %c0_i32 = arith.constant 0 : i32
    %c0_i32_0 = arith.constant 0 : i32
    %c0_i32_1 = arith.constant 0 : i32
    %c0_i32_2 = arith.constant 0 : i32
    return %arg0, %c0_i32, %c0_i32_0, %c0_i32_1 : i32, i32, i32, i32
  }
}

</mosaic_0001>

<bundles_post_ra>
// kernel: tpu_custom_call.1
= control target key start
LH: loop header
LB: loop body
LE: loop exit
PB: predicated region body
PF: predicated region fallthrough
CT: control target
= control target key end

     0   :  { %s2922_s24 = smov 0   ;;  %s3408_s0 = inlined_call_operand.vmem [shape: bf16[2,9,9,128], index: 0, kind: input, shape index: {}]   ;;  %s3409_s1 = inlined_call_operand.vmem [shape: bf16[2,9,9,128], index: 1, kind: input, shape index: {}]   ;;  %s3410_s2 = inlined_call_operand.vmem [shape: bf16[2,9,9,128], index: 2, kind: input, shape index: {}]   ;;  %s3411_s3 = inlined_call_operand.vmem [shape: bf16[2,9,9,128], index: 3, kind: input, shape index: {}]   ;;  %s3412_s4 = inlined_call_operand.vmem [shape: bf16[3,384,128], index: 4, kind: input, shape index: {}]   ;;  %s3413_s5 = inlined_call_operand.vmem [shape: f32[1,128], index: 5, kind: input, shape index: {}]   ;;  %s3414_s6 = inlined_call_operand.vmem [shape: f32[1,128], index: 6, kind: input, shape index: {}]   ;;  %s3415_s7 = inlined_call_operand.vmem [shape: bf16[2,10,10,128], index: 7, kind: output, shape index: {}]  }
   0x1 LB: > { %s2222_s25 = sadd.s32 4294967295, %s2879_s24   ;;  %p2226_p0 = scmp.ge.s32.totalorder %s2879_s24, 1  ;;  %s2879_s24 = sphi %s2922_s24, %s17_s24  }
   0x2   : > { %p267_p1 = scmp.lt.s32.totalorder %s2879_s24, 3 }
   0x4   : > { %p268_p2 = pnand %p2226_p0, %p267_p1 }
   0x5   : > { %v2777_v0 = vld [vmem:[%s3412_s4 + $0x100] sm:$0xff] (!%p268_p2)   ;;  %p314_p3 = scmp.lt.s32.totalorder (!%p268_p2), %s2222_s25, 1  ;;  %v2780_v3 = vld [vmem:[%s3412_s4 + $0x108] sm:$0xff] (!%p268_p2)   ;;  %v2783_v6 = vld [vmem:[%s3412_s4 + $0x110] sm:$0xff] (!%p268_p2)   ;;  %v2881_v10 = vmov (!%p268_p2), 0   ;;  %vm2031_vm3 = vcmask (!%p268_p2), 1040384  }
   0x6   : > { %271 = sbr.rel (%p268_p2) target bundleno = 370 (0x172), region = 48  ;;  %v2778_v1 = vld [vmem:[%s3412_s4 + $0x140] sm:$0xff] (!%p268_p2)   ;;  %2498 = vmatprep.subr.bf16.mxu0 (!%p268_p2), %v2777_v0  ;;  %v2781_v4 = vld [vmem:[%s3412_s4 + $0x148] sm:$0xff] (!%p268_p2)   ;;  %v2784_v7 = vld [vmem:[%s3412_s4 + $0x150] sm:$0xff] (!%p268_p2)   ;;  %vm364_vm0 = vsmask.f32 (!%p268_p2), 3328 }
   0x7   : > { %v2779_v2 = vld [vmem:[%s3412_s4 + $0xc0] sm:$0xff] (!%p268_p2)   ;;  %2654 = vmatprep.subr.bf16.mxu1 (!%p268_p2), %v2778_v1  ;;  %v2782_v5 = vld [vmem:[%s3412_s4 + $0xc8] sm:$0xff] (!%p268_p2)   ;;  %v2785_v8 = vld [vmem:[%s3412_s4 + $0xd0] sm:$0xff] (!%p268_p2)   ;;  %vm365_vm1 = vsmask.f32 (!%p268_p2), 7440  ;;  %vm2042_vm5 = vcmask (!%p268_p2), 1044480  }
   0x8   : > { %2499 = vmatpush3.bf16.msra.mxu0 (!%p268_p2), %v2779_v2  ;;  %2655 = vmatpush3.bf16.msra.mxu1 (!%p268_p2), %v2778_v1  ;;  %v2786_v9 = vld [vmem:[%s3412_s4 + $0x118] sm:$0xff] (!%p268_p2)   ;;  %v2789_v13 = vld [vmem:[%s3412_s4 + $0x120] sm:$0xff] (!%p268_p2)   ;;  %v2792_v16 = vld [vmem:[%s3412_s4 + $0x128] sm:$0xff] (!%p268_p2)   ;;  %vm2032_vm4 = vsmask.f32 (!%p268_p2), 256 }
   0x9   : > { %2500 = vmatprep.subr.bf16.mxu0 (!%p268_p2), %v2780_v3  ;;  %2656 = vmatprep.subr.bf16.mxu1 (!%p268_p2), %v2781_v4  ;;  %v2787_v11 = vld [vmem:[%s3412_s4 + $0x158] sm:$0xff] (!%p268_p2)   ;;  %v2790_v14 = vld [vmem:[%s3412_s4 + $0x160] sm:$0xff] (!%p268_p2)   ;;  %v2793_v17 = vld [vmem:[%s3412_s4 + $0x168] sm:$0xff] (!%p268_p2)   ;;  %vm2043_vm6 = vsmask.f32 (!%p268_p2), 4352 }
   0xa   : > { %v2788_v12 = vld [vmem:[%s3412_s4 + $0xd8] sm:$0xff] (!%p268_p2)   ;;  %v2791_v15 = vld [vmem:[%s3412_s4 + $0xe0] sm:$0xff] (!%p268_p2)   ;;  %v2794_v18 = vld [vmem:[%s3412_s4 + $0xe8] sm:$0xff] (!%p268_p2)  }
   0xb   : > { %v2795_v19 = vld [vmem:[%s3412_s4 + $0x130] sm:$0xff] (!%p268_p2)   ;;  %v2798_v22 = vld [vmem:[%s3412_s4 + $0x138] sm:$0xff] (!%p268_p2)   ;;  %v2803_v36 = vld [vmem:[%s3412_s4 + $0x40] sm:$0xff] (!%p268_p2)  }
   0xc   : > { %2501 = vmatpush3.bf16.msra.mxu0 (!%p268_p2), %v2782_v5  ;;  %2657 = vmatpush3.bf16.msra.mxu1 (!%p268_p2), %v2781_v4  ;;  %v2796_v20 = vld [vmem:[%s3412_s4 + $0x170] sm:$0xff] (!%p268_p2)   ;;  %v2799_v23 = vld [vmem:[%s3412_s4 + $0x178] sm:$0xff] (!%p268_p2)   ;;  %v3040_v37 = vld [vmem:[%s3412_s4 + $0x80] sm:$0xff] (!%p268_p2)  }
   0xd   : > { %s3423_s25 = smov (!%p314_p3, %s2222_s25), 1  ;;  %2502 = vmatprep.subr.bf16.mxu0 %v2783_v6  ;;  %2658 = vmatprep.subr.bf16.mxu1 %v2784_v7  ;;  %v2797_v21 = vld [vmem:[%s3412_s4 + $0xf0] sm:$0xff]   ;;  %v2800_v27 = vld [vmem:[%s3412_s4 + $0xf8] sm:$0xff]   ;;  %vm3048_vm2 = vmor %vm364_vm0, %vm365_vm1 }
   0xe   : > { %s2767_s15 = smul.u32 80, %s3423_s25  ;;  %v2805_v55 = vld [vmem:[%s3412_s4] sm:$0xff]   ;;  %v2806_v2 = vld [vmem:[%s3412_s4 + $0x48] sm:$0xff]   ;;  %vm3335_vm7 = vmand %vm2031_vm3, %vm2032_vm4 }
   0xf   : > { %s2994_s20 = smul.u32 72, %s3423_s25  ;;  %vm3342_vm8 = vmand %vm2042_vm5, %vm2043_vm6 }
  0x10   : > { %s2963_s26 = scalar_lea.vmem %s3415_s7, %s2767_s15  ;;  %2503 = vmatpush3.bf16.msra.mxu0 %v2785_v8  ;;  %2659 = vmatpush3.bf16.msra.mxu1 %v2784_v7 }
  0x11   : > { %2126 = vst [vmem:[%s2963_s26] sm:$0xf] %v2881_v10  ;;  %2127 = vst [vmem:[%s2963_s26 + $0x4] sm:$0x1] %v2881_v10  ;;  %2504 = vmatprep.subr.bf16.mxu0 %v2786_v9  ;;  %2660 = vmatprep.subr.bf16.mxu1 %v2787_v11  ;;  %s3009_s8 = scalar_lea.vmem %s3411_s3, %s2994_s20  ;;  %s3018_s13 = scalar_lea.vmem %s3410_s2, %s2994_s20  ;;  %v2808_v9 = vld [vmem:[%s3412_s4 + $0x8] sm:$0xff]  }
  0x12   : > { %2494 = vst [vmem:[%s2963_s26 + $0x48] sm:$0xf] %v2881_v10  ;;  %2495 = vst [vmem:[%s2963_s26 + $0x4c] sm:$0x1] %v2881_v10  ;;  %v2801_v24 = vld [vmem:[%s3009_s8] ss:$8 sps:$4 sm:$0xff]   ;;  %s3138_s30 = scalar_lea.vmem %s3409_s1, %s2994_s20  ;;  %s3147_s12 = scalar_lea.vmem %s3408_s0, %s2994_s20 }
  0x13   : > { %v591_v25 = vld [vmem:[%s3018_s13] sm:$0xf]  ;;  %v592_v26 = vld [vmem:[%s3018_s13 + $0x8] sm:$0xf]  ;;  %1016 = vmatprep.mubr.bf16.mxu0 %v2801_v24  ;;  %v607_v28 = vld [vmem:[%s3018_s13 + $0x4] sm:$0x1] }
  0x14   : > { %2505 = vmatpush3.bf16.msra.mxu0 %v2788_v12  ;;  %2661 = vmatpush3.bf16.msra.mxu1 %v2787_v11  ;;  %v608_v29 = vld [vmem:[%s3018_s13 + $0xc] sm:$0x1]  ;;  %v616_v30 = vshrl.u32 %v591_v25, 16  ;;  %v619_v31 = vshll.u32 %v591_v25, 16  ;;  %v625_v32 = vshll.u32 %v607_v28, 16  ;;  %v630_v33 = vshrl.u32 %v592_v26, 16 }
  0x15   : > { %2506 = vmatprep.subr.bf16.mxu0 %v2789_v13  ;;  %2662 = vmatprep.subr.bf16.mxu1 %v2790_v14  ;;  %v633_v34 = vshll.u32 %v592_v26, 16  ;;  %v639_v35 = vshll.u32 %v608_v29, 16  ;;  %v593_v44 = vld [vmem:[%s3018_s13 + $0x10] sm:$0xf]  ;;  %v2244_v45 = vcombine.low %v591_v25, %v592_v26  ;;  %v594_v47 = vld [vmem:[%s3018_s13 + $0x18] sm:$0xf] }
  0x16   : > { %v618_v38 = vrot.slane %v616_v30, 4  ;;  %v621_v39 = vrot.slane %v619_v31, 5  ;;  %v627_v40 = vrot.slane %v625_v32, 5  ;;  %v632_v41 = vrot.slane %v630_v33, 4  ;;  %v609_v48 = vld [vmem:[%s3018_s13 + $0x14] sm:$0x1] }
  0x17   : > { %v635_v42 = vrot.slane %v633_v34, 5  ;;  %v641_v43 = vrot.slane %v639_v35, 5  ;;  %v610_v49 = vld [vmem:[%s3018_s13 + $0x1c] sm:$0x1]  ;;  %v644_v52 = vshrl.u32 %v593_v44, 16  ;;  %v647_v53 = vshll.u32 %v593_v44, 16 }
  0x18   : > { %2507 = vmatpush3.bf16.msra.mxu0 %v2791_v15  ;;  %2663 = vmatpush3.bf16.msra.mxu1 %v2790_v14  ;;  %v622_v46 = vor.u32 %v621_v39, %v618_v38  ;;  %v653_v54 = vshll.u32 %v609_v48, 16  ;;  %v658_v57 = vshrl.u32 %v594_v47, 16  ;;  %v661_v58 = vshll.u32 %v594_v47, 16  ;;  %v2811_v11 = vld [vmem:[%s3412_s4 + $0x50] sm:$0xff]   ;;  %v595_v24 = vld [vmem:[%s3018_s13 + $0x20] sm:$0xf] }
  0x19   : > { %2508 = vmatprep.subr.bf16.mxu0 %v2792_v16  ;;  %2664 = vmatprep.subr.bf16.mxu1 %v2793_v17  ;;  %v636_v51 = vor.u32 %v635_v42, %v632_v41  ;;  %v667_v59 = vshll.u32 %v610_v49, 16  ;;  %v646_v61 = vrot.slane %v644_v52, 4  ;;  %v649_v62 = vrot.slane %v647_v53, 5  ;;  %v2809_v13 = vld [vmem:[%s3009_s8 + $0x10] ss:$8 sps:$4 sm:$0xff]   ;;  %v2807_v16 = vld [vmem:[%s3412_s4 + $0x88] sm:$0xff]  }
  0x1a   : > { %v623_v56 = vrot.slane %v622_v46, 4  ;;  %v660_v0 = vrot.slane %v658_v57, 4  ;;  %v663_v1 = vrot.slane %v661_v58, 5  ;;  %v655_v5 = vrot.slane %v653_v54, 5  ;;  %v596_v25 = vld [vmem:[%s3018_s13 + $0x28] sm:$0xf] }
  0x1b   : > { %v637_v60 = vrot.slane %v636_v51, 4  ;;  %v650_v4 = vor.u32 %v649_v62, %v646_v61  ;;  %v669_v8 = vrot.slane %v667_v59, 5  ;;  %v2245_v14 = vcombine.low %v593_v44, %v594_v47  ;;  %v2819_v31 = vld [vmem:[%s3412_s4 + $0x60] sm:$0xff]   ;;  %v2815_v32 = vld [vmem:[%s3412_s4 + $0x98] sm:$0xff]   ;;  %v2822_v38 = vld [vmem:[%s3412_s4 + $0x68] sm:$0xff]  }
  0x1c   : > { %2509 = vmatpush3.bf16.msra.mxu0 %v2794_v18  ;;  %2665 = vmatpush3.bf16.msra.mxu1 %v2793_v17  ;;  %v628_v63 = vsel %vm3048_vm2, %v623_v56, %v627_v40  ;;  %v664_v7 = vor.u32 %v663_v1, %v660_v0  ;;  %v2813_v18 = vld [vmem:[%s3412_s4 + $0x10] sm:$0xff]   ;;  %v672_v26 = vshrl.u32 %v595_v24, 16  ;;  %v686_v28 = vshrl.u32 %v596_v25, 16  ;;  %v2820_v40 = vld [vmem:[%s3412_s4 + $0xa0] sm:$0xff]   ;;  %v2824_v41 = vld [vmem:[%s3412_s4 + $0x28] sm:$0xff]  }
  0x1d   : > { %2510 = vmatprep.subr.bf16.mxu0 %v2795_v19  ;;  %2666 = vmatprep.subr.bf16.mxu1 %v2796_v20  ;;  %v642_v3 = vsel %vm3048_vm2, %v637_v60, %v641_v43  ;;  %v651_v10 = vrot.slane %v650_v4, 4  ;;  %v689_v29 = vshll.u32 %v596_v25, 16  ;;  %v2246_v30 = vcombine.low %v595_v24, %v596_v25  ;;  %v2825_v44 = vld [vmem:[%s3009_s8 + $0x30] ss:$8 sps:$4 sm:$0xff]   ;;  %v611_v49 = vld [vmem:[%s3018_s13 + $0x24] sm:$0x1] }
  0x1e   : > { %v2252_v6 = vcombine.low %v628_v63, %v642_v3  ;;  %v665_v12 = vrot.slane %v664_v7, 4  ;;  %v674_v33 = vrot.slane %v672_v26, 4  ;;  %v688_v35 = vrot.slane %v686_v28, 4  ;;  %v598_v46 = vld [vmem:[%s3018_s13 + $0x38] sm:$0xf]  ;;  %v2827_v56 = vld [vmem:[%s3412_s4 + $0x70] sm:$0xff]  }
  0x1f   : > { %v656_v15 = vsel %vm3048_vm2, %v651_v10, %v655_v5  ;;  %v714_v51 = vshrl.u32 %v598_v46, 16  ;;  %v717_v52 = vshll.u32 %v598_v46, 16  ;;  %v612_v54 = vld [vmem:[%s3018_s13 + $0x2c] sm:$0x1]  ;;  %v2829_v3 = vld [vmem:[%s3412_s4 + $0x30] sm:$0xff]  }
  0x20   : > { %2511 = vmatpush3.bf16.msra.mxu0 %v2797_v21  ;;  %2667 = vmatpush3.bf16.msra.mxu1 %v2796_v20  ;;  %v670_v17 = vsel %vm3048_vm2, %v665_v12, %v669_v8  ;;  %v2814_v20 = vld [vmem:[%s3412_s4 + $0x58] sm:$0xff]   ;;  %v2812_v21 = vld [vmem:[%s3412_s4 + $0x90] sm:$0xff]   ;;  %v695_v60 = vshll.u32 %v612_v54, 16  ;;  %v2823_v61 = vld [vmem:[%s3412_s4 + $0xa8] sm:$0xff]  }
  0x21   : > { %2512 = vmatprep.subr.bf16.mxu0 %v2798_v22  ;;  %2668 = vmatprep.subr.bf16.mxu1 %v2799_v23  ;;  %v2253_v19 = vcombine.low %v656_v15, %v670_v17  ;;  %v2816_v22 = vld [vmem:[%s3412_s4 + $0x18] sm:$0xff]   ;;  %v716_v62 = vrot.slane %v714_v51, 4  ;;  %v719_v63 = vrot.slane %v717_v52, 5  ;;  %v613_v5 = vld [vmem:[%s3018_s13 + $0x34] sm:$0x1] }
  0x22   : > { %2670 = vmatprep.mubr.bf16.mxu1 %v2252_v6  ;;  %v697_v1 = vrot.slane %v695_v60, 5  ;;  %v614_v6 = vld [vmem:[%s3018_s13 + $0x3c] sm:$0x1]  ;;  %v709_v10 = vshll.u32 %v613_v5, 16  ;;  %v341_v25 = vld [vmem:[%s3147_s12 + $0x8] sm:$0xf] }
  0x23   : > { %v720_v7 = vor.u32 %v719_v63, %v716_v62  ;;  %v2830_v12 = vld [vmem:[%s3412_s4 + $0x78] sm:$0xff]   ;;  %v356_v26 = vld [vmem:[%s3147_s12 + $0x4] sm:$0x1]  ;;  %v357_v28 = vld [vmem:[%s3147_s12 + $0xc] sm:$0x1] }
  0x24   : > { %2513 = vmatpush3.bf16.msra.mxu0 %v2800_v27  ;;  %2669 = vmatpush3.bf16.msra.mxu1 %v2799_v23  ;;  %v2817_v23 = vld [vmem:[%s3009_s8 + $0x20] ss:$8 sps:$4 sm:$0xff]   ;;  %v675_v27 = vshll.u32 %v595_v24, 16  ;;  %v359_v51 = vld [vmem:[%s3147_s12 + $0x1c] sm:$0x1] }
  0x25   : > { %2550 = vmatprep.subr.bf16.mxu0 %v2803_v36  ;;  %2678 = vmatprep.subr.bf16.mxu1 %v3040_v37  ;;  %v691_v36 = vrot.slane %v689_v29, 5  ;;  %v721_v15 = vrot.slane %v720_v7, 4  ;;  %v340_v24 = vld [vmem:[%s3147_s12] sm:$0xf]  ;;  %v2840_v5 = vld [vmem:[%s3412_s4 + $0x188] sm:$0xff]  }
  0x26   : > { %v677_v34 = vrot.slane %v675_v27, 5  ;;  %v2232_v27 = vcombine.low %v340_v24, %v341_v25  ;;  %v368_v29 = vshrl.u32 %v340_v24, 16 }
  0x27   : > { %1017 = vmatmul.mubr.bf16.vlgmr.msra.gmra.mrb[0].mxu0 %v2244_v45  ;;  %2671 = vmatmul.mubr.bf16.vlgmr.msra.gmra.mrb[0].mxu1 %v2253_v19  ;;  %v692_v43 = vor.u32 %v691_v36, %v688_v35  ;;  %v597_v45 = vld [vmem:[%s3018_s13 + $0x30] sm:$0xf]  ;;  %v2832_v19 = vld [vmem:[%s3412_s4 + $0x38] sm:$0xff]   ;;  %v391_v35 = vshll.u32 %v357_v28, 16  ;;  %v3170_v36 = vld [vmem:[%s3412_s4 + $0x200] sm:$0xff]  }
  0x28   : > { %2551 = vmatpush3.bf16.msra.mxu0 %v2805_v55  ;;  %1024 = vmatprep.mubr.bf16.mxu0 %v2809_v13  ;;  %v678_v39 = vor.u32 %v677_v34, %v674_v33  ;;  %v700_v47 = vshrl.u32 %v597_v45, 16  ;;  %v703_v48 = vshll.u32 %v597_v45, 16  ;;  %v2247_v53 = vcombine.low %v597_v45, %v598_v46  ;;  %v342_v46 = vld [vmem:[%s3147_s12 + $0x10] sm:$0xf] }
  0x29   : > { %2552 = vmatprep.subr.bf16.mxu0 %v2806_v2  ;;  %2679 = vmatpush3.bf16.msra.mxu1 %v3040_v37  ;;  %v2821_v37 = vld [vmem:[%s3412_s4 + $0x20] sm:$0xff]   ;;  %v681_v55 = vshll.u32 %v611_v49, 16  ;;  %v693_v59 = vrot.slane %v692_v43, 4  ;;  %v382_v33 = vshrl.u32 %v341_v25, 16  ;;  %v385_v34 = vshll.u32 %v341_v25, 16 }
  0x2a   : > { %2680 = vmatprep.subr.bf16.mxu1 %v2807_v16  ;;  %v679_v42 = vrot.slane %v678_v39, 4  ;;  %v702_v57 = vrot.slane %v700_v47, 4  ;;  %v705_v58 = vrot.slane %v703_v48, 5  ;;  %v393_v43 = vrot.slane %v391_v35, 5  ;;  %v343_v47 = vld [vmem:[%s3147_s12 + $0x18] sm:$0xf] }
  0x2b   : > { %v683_v0 = vrot.slane %v681_v55, 5  ;;  %v698_v8 = vsel %vm3048_vm2, %v693_v59, %v697_v1  ;;  %v358_v49 = vld [vmem:[%s3147_s12 + $0x14] sm:$0x1]  ;;  %v396_v52 = vshrl.u32 %v342_v46, 16  ;;  %v2853_v35 = vld [vmem:[%s3412_s4 + $0x1a0] sm:$0xff]  }
  0x2c   : > { %2553 = vmatpush3.bf16.msra.mxu0 %v2808_v9  ;;  %v706_v2 = vor.u32 %v705_v58, %v702_v57  ;;  %v405_v55 = vshll.u32 %v358_v49, 16  ;;  %v413_v57 = vshll.u32 %v343_v47, 16  ;;  %v347_v49 = vld [vmem:[%s3147_s12 + $0x38] sm:$0xf] }
  0x2d   : > { %2554 = vmatprep.subr.bf16.mxu0 %v2811_v11  ;;  %2681 = vmatpush3.bf16.msra.mxu1 %v2807_v16  ;;  %v684_v4 = vsel %vm3048_vm2, %v679_v42, %v683_v0  ;;  %v723_v11 = vshll.u32 %v614_v6, 16  ;;  %v711_v16 = vrot.slane %v709_v10, 5  ;;  %v387_v42 = vrot.slane %v385_v34, 5  ;;  %v2843_v10 = vld [vmem:[%s3412_s4 + $0x1d0] sm:$0xff]  }
  0x2e   : > { %2682 = vmatprep.subr.bf16.mxu1 %v2812_v21  ;;  %v707_v9 = vrot.slane %v706_v2, 4  ;;  %v2254_v13 = vcombine.low %v684_v4, %v698_v8  ;;  %v398_v59 = vrot.slane %v396_v52, 4  ;;  %v407_v63 = vrot.slane %v405_v55, 5 }
  0x2f   : > { %1025 = vmatmul.mubr.bf16.gmra.mrb[4].mxu0 %v2245_v14  ;;  %v2828_v14 = vld [vmem:[%s3412_s4 + $0xb0] sm:$0xff]   ;;  %v725_v17 = vrot.slane %v723_v11, 5  ;;  %v415_v1 = vrot.slane %v413_v57, 5  ;;  %v469_v57 = vshll.u32 %v347_v49, 16 }
  0x30   : > { %2555 = vmatpush3.bf16.msra.mxu0 %v2813_v18  ;;  %1032 = vmatprep.mubr.bf16.mxu0 %v2817_v23  ;;  %v2831_v18 = vld [vmem:[%s3412_s4 + $0xb8] sm:$0xff]  }
  0x31   : > { %2556 = vmatprep.subr.bf16.mxu0 %v2814_v20  ;;  %2683 = vmatpush3.bf16.msra.mxu1 %v2812_v21  ;;  %v712_v20 = vsel %vm3048_vm2, %v707_v9, %v711_v16  ;;  %v726_v21 = vsel %vm3048_vm2, %v721_v15, %v725_v17  ;;  %v2233_v9 = vcombine.low %v342_v46, %v343_v47  ;;  %v2845_v16 = vld [vmem:[%s3412_s4 + $0x190] sm:$0xff]  }
  0x32   : > { %2684 = vmatprep.subr.bf16.mxu1 %v2815_v32  ;;  %2674 = vmatprep.mubr.bf16.mxu1 %v2254_v13  ;;  %v2255_v23 = vcombine.low %v712_v20, %v726_v21  ;;  %v2848_v20 = vld [vmem:[%s3412_s4 + $0x198] sm:$0xff]   ;;  %v2849_v21 = vld [vmem:[%s3138_s30 + $0x20] ss:$8 sps:$4 sm:$0xff]  }
  0x34   : > { %2557 = vmatpush3.bf16.msra.mxu0 %v2816_v22  ;;  %v2833_v22 = vld [vmem:[%s3138_s30] ss:$8 sps:$4 sm:$0xff]   ;;  %2675 = vmatmul.mubr.bf16.gmra.mrb[4].mxu1 %v2255_v23 }
  0x35   : > { %2558 = vmatprep.subr.bf16.mxu0 %v2819_v31  ;;  %2685 = vmatpush3.bf16.msra.mxu1 %v2815_v32  ;;  %v377_v31 = vshll.u32 %v356_v26, 16  ;;  %v2835_v32 = vld [vmem:[%s3412_s4 + $0x1c0] sm:$0xff]   ;;  %v345_v23 = vld [vmem:[%s3147_s12 + $0x28] sm:$0xf] }
  0x36   : > { %2686 = vmatprep.subr.bf16.mxu1 %v2820_v40  ;;  %v438_v26 = vshrl.u32 %v345_v23, 16 }
  0x37   : > { %1033 = vmatmul.mubr.bf16.gmra.mrb[8].mxu0 %v2246_v30  ;;  %v371_v30 = vshll.u32 %v340_v24, 16  ;;  %v379_v39 = vrot.slane %v377_v31, 5 }
  0x38   : > { %2559 = vmatpush3.bf16.msra.mxu0 %v2821_v37  ;;  %1040 = vmatprep.mubr.bf16.mxu0 %v2825_v44  ;;  %v370_v37 = vrot.slane %v368_v29, 4  ;;  %v2838_v44 = vld [vmem:[%s3412_s4 + $0x1c8] sm:$0xff]   ;;  %v2851_v29 = vld [vmem:[%s3412_s4 + $0x1e0] sm:$0xff]  }
  0x39   : > { %2560 = vmatprep.subr.bf16.mxu0 %v2822_v38  ;;  %2687 = vmatpush3.bf16.msra.mxu1 %v2820_v40  ;;  %v373_v38 = vrot.slane %v371_v30, 5  ;;  %v2837_v40 = vld [vmem:[%s3412_s4 + $0x180] sm:$0xff]   ;;  %v2847_v30 = vld [vmem:[%s3412_s4 + $0x218] sm:$0xff]  }
  0x3a   : > { %2688 = vmatprep.subr.bf16.mxu1 %v2823_v61 }
  0x3b   : > { %v374_v45 = vor.u32 %v373_v38, %v370_v37 }
  0x3c   : > { %2561 = vmatpush3.bf16.msra.mxu0 %v2824_v41  ;;  %v384_v41 = vrot.slane %v382_v33, 4  ;;  %v440_v33 = vrot.slane %v438_v26, 4 }
  0x3d   : > { %2562 = vmatprep.subr.bf16.mxu0 %v2827_v56  ;;  %2689 = vmatpush3.bf16.msra.mxu1 %v2823_v61  ;;  %v375_v54 = vrot.slane %v374_v45, 4  ;;  %v410_v56 = vshrl.u32 %v343_v47, 16  ;;  %v419_v61 = vshll.u32 %v359_v51, 16  ;;  %v346_v47 = vld [vmem:[%s3147_s12 + $0x30] sm:$0xf] }
  0x3e   : > { %2690 = vmatprep.subr.bf16.mxu1 %v2828_v14  ;;  %v388_v48 = vor.u32 %v387_v42, %v384_v41  ;;  %v2857_v42 = vld [vmem:[%s3138_s30 + $0x30] ss:$8 sps:$4 sm:$0xff]   ;;  %v452_v51 = vshrl.u32 %v346_v47, 16  ;;  %v455_v52 = vshll.u32 %v346_v47, 16 }
  0x3f   : > { %1041 = vmatmul.mubr.bf16.gmra.mrb[12].mxu0 %v2247_v53  ;;  %v399_v53 = vshll.u32 %v342_v46, 16  ;;  %v380_v62 = vsel %vm3048_vm2, %v375_v54, %v379_v39  ;;  %v412_v0 = vrot.slane %v410_v56, 4  ;;  %v421_v4 = vrot.slane %v419_v61, 5  ;;  %v2852_v39 = vld [vmem:[%s3412_s4 + $0x220] sm:$0xff]   ;;  %v2855_v54 = vld [vmem:[%s3412_s4 + $0x228] sm:$0xff]  }
  0x40   : > { %2563 = vmatpush3.bf16.msra.mxu0 %v2829_v3  ;;  %1290 = vmatprep.mubr.bf16.mxu0 %v2833_v22  ;;  %v389_v58 = vrot.slane %v388_v48, 4  ;;  %v344_v22 = vld [vmem:[%s3147_s12 + $0x20] sm:$0xf]  ;;  %v466_v56 = vshrl.u32 %v347_v49, 16  ;;  %v454_v61 = vrot.slane %v452_v51, 4 }
  0x41   : > { %2564 = vmatprep.subr.bf16.mxu0 %v2830_v12  ;;  %2691 = vmatpush3.bf16.msra.mxu1 %v2828_v14  ;;  %v401_v60 = vrot.slane %v399_v53, 5  ;;  %v416_v7 = vor.u32 %v415_v1, %v412_v0  ;;  %v2841_v12 = vld [vmem:[%s3138_s30 + $0x10] ss:$8 sps:$4 sm:$0xff]   ;;  %v2839_v14 = vld [vmem:[%s3412_s4 + $0x208] sm:$0xff]   ;;  %v424_v24 = vshrl.u32 %v344_v22, 16  ;;  %v427_v25 = vshll.u32 %v344_v22, 16 }
  0x42   : > { %2692 = vmatprep.subr.bf16.mxu1 %v2831_v18  ;;  %v394_v2 = vsel %vm3048_vm2, %v389_v58, %v393_v43  ;;  %v2234_v28 = vcombine.low %v344_v22, %v345_v23  ;;  %v360_v43 = vld [vmem:[%s3147_s12 + $0x24] sm:$0x1]  ;;  %v2859_v53 = vld [vmem:[%s3412_s4 + $0x1f0] sm:$0xff]   ;;  %v2235_v58 = vcombine.low %v346_v47, %v347_v49  ;;  %v2352_v22 = vld [vmem:[%s3147_s12 + $0x8] sm:$0xf] }
  0x43   : > { %v402_v3 = vor.u32 %v401_v60, %v398_v59  ;;  %v2240_v6 = vcombine.low %v380_v62, %v394_v2  ;;  %v417_v11 = vrot.slane %v416_v7, 4  ;;  %v426_v31 = vrot.slane %v424_v24, 4  ;;  %v362_v59 = vld [vmem:[%s3147_s12 + $0x34] sm:$0x1]  ;;  %v2368_v24 = vld [vmem:[%s3147_s12 + $0xc] sm:$0x1] }
  0x44   : > { %2565 = vmatpush3.bf16.msra.mxu0 %v2832_v19  ;;  %v2844_v19 = vld [vmem:[%s3412_s4 + $0x210] sm:$0xff]   ;;  %v433_v45 = vshll.u32 %v360_v43, 16  ;;  %v457_v62 = vrot.slane %v455_v52, 5  ;;  %v461_v0 = vshll.u32 %v362_v59, 16  ;;  %v468_v2 = vrot.slane %v466_v56, 4 }
  0x45   : > { %2602 = vmatprep.subr.bf16.mxu0 %v2835_v32  ;;  %2693 = vmatpush3.bf16.msra.mxu1 %v2831_v18  ;;  %v403_v8 = vrot.slane %v402_v3, 4  ;;  %v422_v15 = vsel %vm3048_vm2, %v417_v11, %v421_v4  ;;  %v2846_v18 = vld [vmem:[%s3412_s4 + $0x1d8] sm:$0xff]   ;;  %v429_v32 = vrot.slane %v427_v25, 5  ;;  %v471_v3 = vrot.slane %v469_v57, 5  ;;  %v2369_v25 = vld [vmem:[%s3147_s12 + $0x14] sm:$0x1] }
  0x46   : > { %2702 = vmatprep.subr.bf16.mxu1 %v3170_v36  ;;  %2694 = vmatprep.mubr.bf16.mxu1 %v2240_v6  ;;  %v435_v55 = vrot.slane %v433_v45, 5  ;;  %v458_v7 = vor.u32 %v457_v62, %v454_v61  ;;  %v1415_v26 = vshrl.u32 %v2352_v22, 16  ;;  %v2356_v62 = vld [vmem:[%s3147_s12 + $0x28] sm:$0xf] }
  0x47   : > { %1291 = vmatmul.mubr.bf16.vlgmr.msra.gmra.mrb[16].mxu0 %v2232_v27  ;;  %v408_v13 = vsel %vm3048_vm2, %v403_v8, %v407_v63  ;;  %v441_v27 = vshll.u32 %v345_v23, 16  ;;  %v430_v37 = vor.u32 %v429_v32, %v426_v31  ;;  %v363_v63 = vld [vmem:[%s3147_s12 + $0x3c] sm:$0x1]  ;;  %v463_v8 = vrot.slane %v461_v0, 5  ;;  %v2353_v23 = vld [vmem:[%s3147_s12 + $0x10] sm:$0xf] }
  0x48   : > { %2603 = vmatpush3.bf16.msra.mxu0 %v2837_v40  ;;  %1298 = vmatprep.mubr.bf16.mxu0 %v2841_v12  ;;  %v2241_v17 = vcombine.low %v408_v13, %v422_v15  ;;  %v2856_v40 = vld [vmem:[%s3412_s4 + $0x1a8] sm:$0xff]   ;;  %v475_v4 = vshll.u32 %v363_v63, 16  ;;  %v472_v11 = vor.u32 %v471_v3, %v468_v2  ;;  %v2860_v13 = vld [vmem:[%s3412_s4 + $0x230] sm:$0xff]   ;;  %v2864_v15 = vld [vmem:[%s3412_s4 + $0x1b8] sm:$0xff]   ;;  %v1438_v31 = vshll.u32 %v2369_v25, 16 }
  0x49   : > { %2604 = vmatprep.subr.bf16.mxu0 %v2838_v44  ;;  %v443_v34 = vrot.slane %v441_v27, 5  ;;  %v431_v41 = vrot.slane %v430_v37, 4  ;;  %v361_v44 = vld [vmem:[%s3147_s12 + $0x2c] sm:$0x1]  ;;  %v1418_v27 = vshll.u32 %v2352_v22, 16  ;;  %v2376_v32 = vcombine.low %v2352_v22, %v2353_v23 }
  0x4a   : > { %2695 = vmatmul.mubr.bf16.vlgmr.msra.gmra.mrb[0].mxu1 %v2241_v17  ;;  %v447_v48 = vshll.u32 %v361_v44, 16  ;;  %v477_v12 = vrot.slane %v475_v4, 5  ;;  %v2357_v63 = vld [vmem:[%s3147_s12 + $0x30] sm:$0xf]  ;;  %v2372_v3 = vld [vmem:[%s3147_s12 + $0x2c] sm:$0x1] }
  0x4b   : > { %2703 = vmatpush3.bf16.msra.mxu1 %v3170_v36  ;;  %v2854_v36 = vld [vmem:[%s3412_s4 + $0x1e8] sm:$0xff]   ;;  %v444_v38 = vor.u32 %v443_v34, %v440_v33  ;;  %v436_v1 = vsel %vm3048_vm2, %v431_v41, %v435_v55  ;;  %v2354_v33 = vld [vmem:[%s3147_s12 + $0x18] sm:$0xf]  ;;  %v2355_v34 = vld [vmem:[%s3147_s12 + $0x20] sm:$0xf]  ;;  %v1440_v41 = vrot.slane %v1438_v31, 5 }
  0x4c   : > { %2605 = vmatpush3.bf16.msra.mxu0 %v2840_v5  ;;  %2704 = vmatprep.subr.bf16.mxu1 %v2839_v14  ;;  %v449_v60 = vrot.slane %v447_v48, 5  ;;  %v2861_v5 = vld [vmem:[%s3412_s4 + $0x1b0] sm:$0xff]   ;;  %v1443_v43 = vshrl.u32 %v2354_v33, 16  ;;  %v1446_v44 = vshll.u32 %v2354_v33, 16  ;;  %v1457_v47 = vshrl.u32 %v2355_v34, 16 }
  0x4d   : > { %2606 = vmatprep.subr.bf16.mxu0 %v2843_v10  ;;  %v445_v46 = vrot.slane %v444_v38, 4  ;;  %v1460_v48 = vshll.u32 %v2355_v34, 16  ;;  %v2377_v0 = vcombine.low %v2354_v33, %v2355_v34  ;;  %v2373_v4 = vld [vmem:[%s3147_s12 + $0x34] sm:$0x1]  ;;  %v2375_v25 = vld [vmem:[%s3147_s12 + $0x44] sm:$0x1] }
  0x4e   : > { %v1445_v51 = vrot.slane %v1443_v43, 4  ;;  %v1448_v52 = vrot.slane %v1446_v44, 5  ;;  %v1459_v56 = vrot.slane %v1457_v47, 4  ;;  %v2871_v43 = vld [vmem:[%s3138_s30 + $0x38] ss:$8 sps:$4 sm:$0xff]  }
  0x4f   : > { %1299 = vmatmul.mubr.bf16.gmra.mrb[20].mxu0 %v2233_v9  ;;  %2705 = vmatpush3.bf16.msra.mxu1 %v2839_v14  ;;  %v450_v6 = vsel %vm3048_vm2, %v445_v46, %v449_v60  ;;  %v2862_v9 = vld [vmem:[%s3412_s4 + $0x1f8] sm:$0xff]   ;;  %v459_v14 = vrot.slane %v458_v7, 4  ;;  %v1462_v57 = vrot.slane %v1460_v48, 5 }
  0x50   : > { %2607 = vmatpush3.bf16.msra.mxu0 %v2845_v16  ;;  %1306 = vmatprep.mubr.bf16.mxu0 %v2849_v21  ;;  %v2242_v10 = vcombine.low %v436_v1, %v450_v6  ;;  %v473_v16 = vrot.slane %v472_v11, 4  ;;  %v1449_v60 = vor.u32 %v1448_v52, %v1445_v51  ;;  %v1474_v6 = vshll.u32 %v2356_v62, 16  ;;  %v2358_v11 = vld [vmem:[%s3147_s12 + $0x38] sm:$0xf] }
  0x51   : > { %2608 = vmatprep.subr.bf16.mxu0 %v2846_v18  ;;  %2706 = vmatprep.subr.bf16.mxu1 %v2844_v19  ;;  %v464_v17 = vsel %vm3048_vm2, %v459_v14, %v463_v8  ;;  %v2863_v18 = vld [vmem:[%s3412_s4 + $0x238] sm:$0xff]   ;;  %v1463_v2 = vor.u32 %v1462_v57, %v1459_v56 }
  0x52   : > { %2698 = vmatprep.mubr.bf16.mxu1 %v2242_v10  ;;  %v1450_v8 = vrot.slane %v1449_v60, 4  ;;  %v1485_v10 = vshrl.u32 %v2357_v63, 16 }
  0x53   : > { %2707 = vmatpush3.bf16.msra.mxu1 %v2844_v19  ;;  %v478_v19 = vsel %vm3048_vm2, %v473_v16, %v477_v12  ;;  %v2359_v16 = vld [vmem:[%s3147_s12 + $0x40] sm:$0xf] }
  0x54   : > { %2609 = vmatpush3.bf16.msra.mxu0 %v2848_v20  ;;  %2708 = vmatprep.subr.bf16.mxu1 %v2847_v30  ;;  %v2865_v20 = vld [vmem:[%s3138_s30 + $0x8] ss:$8 sps:$4 sm:$0xff]   ;;  %v2243_v21 = vcombine.low %v464_v17, %v478_v19  ;;  %v1487_v19 = vrot.slane %v1485_v10, 4  ;;  %v1513_v34 = vshrl.u32 %v2359_v16, 16  ;;  %v2379_v57 = vcombine.low %v2358_v11, %v2359_v16 }
  0x55   : > { %2610 = vmatprep.subr.bf16.mxu0 %v2851_v29  ;;  %v1429_v29 = vshrl.u32 %v2353_v23, 16 }
  0x56   : > { %2699 = vmatmul.mubr.bf16.gmra.mrb[4].mxu1 %v2243_v21  ;;  %v2374_v21 = vld [vmem:[%s3147_s12 + $0x3c] sm:$0x1] }
  0x57   : > { %1307 = vmatmul.mubr.bf16.gmra.mrb[24].mxu0 %v2234_v28  ;;  %2709 = vmatpush3.bf16.msra.mxu1 %v2847_v30  ;;  %v1424_v28 = vshll.u32 %v2368_v24, 16  ;;  %v1432_v30 = vshll.u32 %v2353_v23, 16  ;;  %v1431_v38 = vrot.slane %v1429_v29, 4  ;;  %v1494_v24 = vshll.u32 %v2373_v4, 16 }
  0x58   : > { %2611 = vmatpush3.bf16.msra.mxu0 %v2853_v35  ;;  %1314 = vmatprep.mubr.bf16.mxu0 %v2857_v42  ;;  %v1417_v35 = vrot.slane %v1415_v26, 4  ;;  %v2371_v42 = vld [vmem:[%s3147_s12 + $0x24] sm:$0x1]  ;;  %v1499_v26 = vshrl.u32 %v2358_v11, 16  ;;  %v1502_v29 = vshll.u32 %v2358_v11, 16 }
  0x59   : > { %2612 = vmatprep.subr.bf16.mxu0 %v2854_v36  ;;  %2710 = vmatprep.subr.bf16.mxu1 %v2852_v39  ;;  %v1420_v36 = vrot.slane %v1418_v27, 5  ;;  %v1426_v37 = vrot.slane %v1424_v28, 5 }
  0x5a   : > { %v1501_v33 = vrot.slane %v1499_v26, 4 }
  0x5b   : > { %2711 = vmatpush3.bf16.msra.mxu1 %v2852_v39  ;;  %v2370_v39 = vld [vmem:[%s3147_s12 + $0x1c] sm:$0x1]  ;;  %v1421_v45 = vor.u32 %v1420_v36, %v1417_v35  ;;  %v2869_v35 = vld [vmem:[%s3138_s30 + $0x28] ss:$8 sps:$4 sm:$0xff]  }
  0x5c   : > { %2613 = vmatpush3.bf16.msra.mxu0 %v2856_v40  ;;  %2712 = vmatprep.subr.bf16.mxu1 %v2855_v54  ;;  %v1434_v40 = vrot.slane %v1432_v30, 5  ;;  %v1452_v46 = vshll.u32 %v2370_v39, 16  ;;  %v1508_v30 = vshll.u32 %v2374_v21, 16  ;;  %v1516_v39 = vshll.u32 %v2359_v16, 16 }
  0x5d   : > { %2614 = vmatprep.subr.bf16.mxu0 %v2859_v53  ;;  %v1466_v53 = vshll.u32 %v2371_v42, 16  ;;  %v2378_v42 = vcombine.low %v2356_v62, %v2357_v63 }
  0x5e   : > { %v1435_v49 = vor.u32 %v1434_v40, %v1431_v38  ;;  %v1454_v55 = vrot.slane %v1452_v46, 5  ;;  %v1510_v38 = vrot.slane %v1508_v30, 5  ;;  %v1515_v40 = vrot.slane %v1513_v34, 4 }
  0x5f   : > { %1315 = vmatmul.mubr.bf16.gmra.mrb[28].mxu0 %v2235_v58  ;;  %2713 = vmatpush3.bf16.msra.mxu1 %v2855_v54  ;;  %v1422_v54 = vrot.slane %v1421_v45, 4  ;;  %v2867_v58 = vld [vmem:[%s3138_s30 + $0x18] ss:$8 sps:$4 sm:$0xff]   ;;  %v1468_v61 = vrot.slane %v1466_v53, 5  ;;  %v1518_v47 = vrot.slane %v1516_v39, 5 }
  0x60   : > { %2615 = vmatpush3.bf16.msra.mxu0 %v2861_v5  ;;  %2714 = vmatprep.subr.bf16.mxu1 %v2860_v13  ;;  %v1436_v59 = vrot.slane %v1435_v49, 4  ;;  %v1471_v5 = vshrl.u32 %v2356_v62, 16  ;;  %v1455_v17 = vsel %vm3048_vm2, %v1450_v8, %v1454_v55 }
  0x61   : > { %2616 = vmatprep.subr.bf16.mxu0 %v2862_v9  ;;  %1815 = vmatprep.mubr.bf16.mxu0 %v2865_v20  ;;  %v1427_v1 = vsel %vm3048_vm2, %v1422_v54, %v1426_v37  ;;  %v1480_v9 = vshll.u32 %v2372_v3, 16  ;;  %v1488_v20 = vshll.u32 %v2357_v63, 16  ;;  %v1504_v37 = vrot.slane %v1502_v29, 5 }
  0x62   : > { %v1441_v7 = vsel %vm3048_vm2, %v1436_v59, %v1440_v41  ;;  %v1473_v14 = vrot.slane %v1471_v5, 4  ;;  %v1522_v41 = vshll.u32 %v2375_v25, 16  ;;  %v1519_v51 = vor.u32 %v1518_v47, %v1515_v40 }
  0x63   : > { %2715 = vmatpush3.bf16.msra.mxu1 %v2860_v13  ;;  %v2384_v12 = vcombine.low %v1427_v1, %v1441_v7  ;;  %v1464_v13 = vrot.slane %v1463_v2, 4  ;;  %v1490_v28 = vrot.slane %v1488_v20, 5  ;;  %v1505_v46 = vor.u32 %v1504_v37, %v1501_v33 }
  0x64   : > { %2617 = vmatpush3.bf16.msra.mxu0 %v2864_v15  ;;  %2716 = vmatprep.subr.bf16.mxu1 %v2863_v18  ;;  %v1476_v15 = vrot.slane %v1474_v6, 5  ;;  %v1524_v52 = vrot.slane %v1522_v41, 5  ;;  %v1520_v55 = vrot.slane %v1519_v51, 4 }
  0x65   : > { %2718 = vmatprep.mubr.bf16.mxu1 %v2384_v12  ;;  %v1469_v22 = vsel %vm3048_vm2, %v1464_v13, %v1468_v61  ;;  %v1491_v36 = vor.u32 %v1490_v28, %v1487_v19  ;;  %v1506_v49 = vrot.slane %v1505_v46, 4 }
  0x66   : > { %v1477_v23 = vor.u32 %v1476_v15, %v1473_v14  ;;  %v2385_v27 = vcombine.low %v1455_v17, %v1469_v22  ;;  %v1525_v56 = vsel %vm3048_vm2, %v1520_v55, %v1524_v52 }
  0x67   : > { %1816 = vmatmul.mubr.bf16.vlgmr.msra.gmra.mrb[32].mxu0 %v2376_v32  ;;  %2717 = vmatpush3.bf16.msra.mxu1 %v2863_v18  ;;  %v1482_v18 = vrot.slane %v1480_v9, 5  ;;  %v1496_v32 = vrot.slane %v1494_v24, 5  ;;  %v1492_v45 = vrot.slane %v1491_v36, 4  ;;  %v1511_v54 = vsel %vm3048_vm2, %v1506_v49, %v1510_v38 }
  0x68   : > { %1823 = vmatprep.mubr.bf16.mxu0 %v2867_v58  ;;  %v1478_v31 = vrot.slane %v1477_v23, 4  ;;  %v2387_v58 = vcombine.low %v1511_v54, %v1525_v56 }
  0x69   : > { %v1497_v48 = vsel %vm3048_vm2, %v1492_v45, %v1496_v32 }
  0x6a   : > { %2719 = vmatmul.mubr.bf16.vlgmr.msra.gmra.mrb[0].mxu1 %v2385_v27  ;;  %v1483_v44 = vsel %vm3048_vm2, %v1478_v31, %v1482_v18 }
  0x6b   : > { %v2386_v53 = vcombine.low %v1483_v44, %v1497_v48 }
  0x6d   : > { %2722 = vmatprep.mubr.bf16.mxu1 %v2386_v53 }
  0x6f   : > { %1824 = vmatmul.mubr.bf16.gmra.mrb[36].mxu0 %v2377_v0 }
  0x70   : > { %1831 = vmatprep.mubr.bf16.mxu0 %v2869_v35 }
  0x72   : > { %2723 = vmatmul.mubr.bf16.gmra.mrb[4].mxu1 %v2387_v58 }
  0x77   : > { %1832 = vmatmul.mubr.bf16.gmra.mrb[40].mxu0 %v2378_v42 }
  0x78   : > { %1839 = vmatprep.mubr.bf16.mxu0 %v2871_v43 }
  0x7f   : > { %1840 = vmatmul.mubr.bf16.gmra.mrb[44].mxu0 %v2379_v57 }
  0xfa   : > { %v2514_v59 = vpop.f32.mrb[0].mxu0 }
  0xfb   : > { %v2515_v60 = vpop.f32.mrb[1].mxu0 }
  0xfc   : > { %v2516_v61 = vadd.f32 %v2515_v60, %v2514_v59  ;;  %v2517_v62 = vpop.f32.mrb[2].mxu0 }
  0xfd   : > { %v2518_v63 = vpop.f32.mrb[3].mxu0 }
  0xfe   : > { %v2519_v0 = vadd.f32 %v2518_v63, %v2517_v62 }
 0x102   : > { %v2520_v1 = vpop.f32.mrb[4].mxu0 }
 0x103   : > { %v2521_v2 = vpop.f32.mrb[5].mxu0 }
 0x104   : > { %v2522_v3 = vadd.f32 %v2521_v2, %v2520_v1  ;;  %v2523_v4 = vpop.f32.mrb[6].mxu0 }
 0x105   : > { %v2524_v5 = vpop.f32.mrb[7].mxu0 }
 0x106   : > { %v2525_v6 = vadd.f32 %v2524_v5, %v2523_v4  ;;  %v3314_v4 = vld [vmem:[%s3413_s5] ss:$0 sm:$0xff] }
 0x10a   : > { %v2526_v7 = vpop.f32.mrb[8].mxu0 }
 0x10b   : > { %v2527_v8 = vpop.f32.mrb[9].mxu0 }
 0x10c   : > { %v2528_v50 = vadd.f32 %v2527_v8, %v2526_v7  ;;  %v2529_v9 = vpop.f32.mrb[10].mxu0 }
 0x10d   : > { %v2530_v10 = vpop.f32.mrb[11].mxu0 }
 0x10e   : > { %v2531_v11 = vadd.f32 %v2530_v10, %v2529_v9 }
 0x112   : > { %v2532_v12 = vpop.f32.mrb[12].mxu0 }
 0x113   : > { %v2533_v13 = vpop.f32.mrb[13].mxu0 }
 0x114   : > { %v2534_v14 = vadd.f32 %v2533_v13, %v2532_v12  ;;  %v2535_v15 = vpop.f32.mrb[14].mxu0 }
 0x115   : > { %v2536_v16 = vpop.f32.mrb[15].mxu0 }
 0x116   : > { %v2537_v17 = vadd.f32 %v2536_v16, %v2535_v15 }
 0x11a   : > { %v2566_v18 = vpop.f32.mrb[16].mxu0 }
 0x11b   : > { %v2567_v19 = vpop.f32.mrb[17].mxu0 }
 0x11c   : > { %v2568_v20 = vadd.f32 %v2567_v19, %v2566_v18  ;;  %v2569_v21 = vpop.f32.mrb[18].mxu0 }
 0x11d   : > { %v2570_v22 = vpop.f32.mrb[19].mxu0 }
 0x11e   : > { %v2729_v23 = vadd.f32 %v2568_v20, %v2516_v61  ;;  %v2571_v24 = vadd.f32 %v2570_v22, %v2569_v21 }
 0x120   : > { %v2735_v25 = vadd.f32 %v2571_v24, %v2519_v0 }
 0x122   : > { %v2572_v26 = vpop.f32.mrb[20].mxu0 }
 0x123   : > { %v2573_v27 = vpop.f32.mrb[21].mxu0 }
 0x124   : > { %v2574_v28 = vadd.f32 %v2573_v27, %v2572_v26  ;;  %v2575_v29 = vpop.f32.mrb[22].mxu0 }
 0x125   : > { %v2576_v30 = vpop.f32.mrb[23].mxu0 }
 0x126   : > { %v2726_v31 = vadd.f32 %v2574_v28, %v2522_v3  ;;  %v2577_v32 = vadd.f32 %v2576_v30, %v2575_v29 }
 0x128   : > { %v2732_v33 = vadd.f32 %v2577_v32, %v2525_v6 }
 0x12a   : > { %v2578_v34 = vpop.f32.mrb[24].mxu0 }
 0x12b   : > { %v2579_v35 = vpop.f32.mrb[25].mxu0 }
 0x12c   : > { %v2580_v36 = vadd.f32 %v2579_v35, %v2578_v34  ;;  %v2581_v37 = vpop.f32.mrb[26].mxu0 }
 0x12d   : > { %v2582_v38 = vpop.f32.mrb[27].mxu0 }
 0x12e   : > { %v2741_v39 = vadd.f32 %v2580_v36, %v2528_v50  ;;  %v2583_v40 = vadd.f32 %v2582_v38, %v2581_v37  ;;  %v3319_v50 = vld [vmem:[%s3414_s6] ss:$0 sm:$0xff] }
 0x130   : > { %v2747_v41 = vadd.f32 %v2583_v40, %v2531_v11 }
 0x132   : > { %v2584_v42 = vpop.f32.mrb[28].mxu0 }
 0x133   : > { %v2585_v43 = vpop.f32.mrb[29].mxu0 }
 0x134   : > { %v2586_v44 = vadd.f32 %v2585_v43, %v2584_v42  ;;  %v2587_v45 = vpop.f32.mrb[30].mxu0 }
 0x135   : > { %v2588_v46 = vpop.f32.mrb[31].mxu0 }
 0x136   : > { %v3307_v47 = vadd.f32 %v2586_v44, %v2534_v14  ;;  %v2589_v48 = vadd.f32 %v2588_v46, %v2587_v45 }
 0x138   : > { %v3309_v49 = vadd.f32 %v2589_v48, %v2537_v17 }
 0x13a   : > { %v2618_v51 = vpop.f32.mrb[32].mxu0 }
 0x13b   : > { %v2619_v52 = vpop.f32.mrb[33].mxu0 }
 0x13c   : > { %v2620_v53 = vadd.f32 %v2619_v52, %v2618_v51  ;;  %v2621_v54 = vpop.f32.mrb[34].mxu0 }
 0x13d   : > { %v2622_v55 = vpop.f32.mrb[35].mxu0  ;;  %v2720_v0 = vpop.f32.mrb[0].mxu1 }
 0x13e   : > { %v2730_v56 = vadd.f32 %v2729_v23, %v2620_v53  ;;  %v2623_v57 = vadd.f32 %v2622_v55, %v2621_v54  ;;  %v1882_v3 = vpop.f32.mrb[1].mxu1 }
 0x13f   : > { %v2721_v6 = vpop.f32.mrb[2].mxu1 }
 0x140   : > { %v2736_v58 = vadd.f32 %v2735_v25, %v2623_v57  ;;  %v2731_v5 = vadd.f32 %v2730_v56, %v1882_v3  ;;  %v1885_v9 = vpop.f32.mrb[3].mxu1 }
 0x142   : > { %v2624_v59 = vpop.f32.mrb[36].mxu0  ;;  %v1928_v10 = vmul.f32 %v2731_v5, %v3314_v4  ;;  %v2737_v11 = vadd.f32 %v2736_v58, %v1885_v9 }
 0x143   : > { %v2625_v60 = vpop.f32.mrb[37].mxu0 }
 0x144   : > { %v2626_v61 = vadd.f32 %v2625_v60, %v2624_v59  ;;  %v2627_v62 = vpop.f32.mrb[38].mxu0  ;;  %v1943_v16 = vadd.f32 %v3319_v50, %v1928_v10  ;;  %v1929_v17 = vmul.f32 %v2737_v11, %v3314_v4 }
 0x145   : > { %v2628_v63 = vpop.f32.mrb[39].mxu0 }
 0x146   : > { %v2727_v1 = vadd.f32 %v2726_v31, %v2626_v61  ;;  %v2629_v2 = vadd.f32 %v2628_v63, %v2627_v62  ;;  %v1951_v23 = vmax.f32 %v1943_v16, 0.0  ;;  %v1944_v24 = vadd.f32 %v3319_v50, %v1929_v17 }
 0x148   : > { %v2728_v7 = vadd.f32 %v2727_v1, %v2720_v0  ;;  %v2733_v8 = vadd.f32 %v2732_v33, %v2629_v2  ;;  %v1959_v29 = vpack.c.bf16 %v1951_v23, %v1951_v23  ;;  %v1952_v30 = vmax.f32 %v1944_v24, 0.0  ;;  %v3329_v33 = vpop.f32.mrb[4].mxu1 }
 0x149   : > { %v1898_v38 = vpop.f32.mrb[5].mxu1 }
 0x14a   : > { %v1930_v12 = vmul.f32 %v2728_v7, %v3314_v4  ;;  %v2734_v13 = vadd.f32 %v2733_v8, %v2721_v6  ;;  %v2630_v14 = vpop.f32.mrb[40].mxu0  ;;  %v1968_v35 = vshrl.u32 %v1959_v29, 16  ;;  %v1960_v36 = vpack.c.bf16 %v1952_v30, %v1952_v30 }
 0x14b   : > { %v2631_v15 = vpop.f32.mrb[41].mxu0  ;;  %v1971_v42 = vshll.u32 %v1959_v29, 16 }
 0x14c   : > { %v1945_v18 = vadd.f32 %v3319_v50, %v1930_v12  ;;  %v1931_v19 = vmul.f32 %v2734_v13, %v3314_v4  ;;  %v2633_v20 = vpop.f32.mrb[42].mxu0  ;;  %v2632_v21 = vadd.f32 %v2631_v15, %v2630_v14  ;;  %v1970_v48 = vrot.slane %v1968_v35, 7 }
 0x14d   : > { %v2634_v22 = vpop.f32.mrb[43].mxu0  ;;  %v1975_v51 = vshrl.u32 %v1960_v36, 16  ;;  %v1978_v52 = vshll.u32 %v1960_v36, 16 }
 0x14e   : > { %v1953_v25 = vmax.f32 %v1945_v18, 0.0  ;;  %v1946_v26 = vadd.f32 %v3319_v50, %v1931_v19  ;;  %v2742_v27 = vadd.f32 %v2741_v39, %v2632_v21  ;;  %v2635_v28 = vadd.f32 %v2634_v22, %v2633_v20  ;;  %v3331_v39 = vpop.f32.mrb[6].mxu1 }
 0x14f   : > { %v1901_v54 = vpop.f32.mrb[7].mxu1  ;;  %v1973_v61 = vor.u32 %v1971_v42, %v1970_v48  ;;  %v1977_v63 = vrot.slane %v1975_v51, 7 }
 0x150   : > { %v1961_v31 = vpack.c.bf16 %v1953_v25, %v1953_v25  ;;  %v1954_v32 = vmax.f32 %v1946_v26, 0.0  ;;  %v2748_v34 = vadd.f32 %v2747_v41, %v2635_v28  ;;  %v2743_v45 = vadd.f32 %v2742_v27, %v1898_v38 }
 0x151   : > { %v2034_v7 = vsel %vm3335_vm7, 0, %v1973_v61  ;;  %v1980_v8 = vor.u32 %v1978_v52, %v1977_v63 }
 0x152   : > { %v1982_v37 = vshrl.u32 %v1961_v31, 16  ;;  %v2636_v40 = vpop.f32.mrb[44].mxu0  ;;  %v1985_v43 = vshll.u32 %v1961_v31, 16  ;;  %v1962_v44 = vpack.c.bf16 %v1954_v32, %v1954_v32  ;;  %v1932_v58 = vmul.f32 %v2743_v45, %v3314_v4 }
 0x153   : > { %v2637_v46 = vpop.f32.mrb[45].mxu0  ;;  %v2749_v59 = vadd.f32 %v2748_v34, %v1901_v54  ;;  %v2045_v11 = vsel %vm3342_vm8, %v2034_v7, 0  ;;  %v2035_v17 = vsel %vm3335_vm7, 0, %v1980_v8 }
 0x154   : > { %v1984_v53 = vrot.slane %v1982_v37, 7  ;;  %v2639_v55 = vpop.f32.mrb[46].mxu0  ;;  %v1989_v56 = vshrl.u32 %v1962_v44, 16  ;;  %v1992_v57 = vshll.u32 %v1962_v44, 16  ;;  %v2638_v1 = vadd.f32 %v2637_v46, %v2636_v40 }
 0x155   : > { %v2640_v60 = vpop.f32.mrb[47].mxu0  ;;  %v1947_v3 = vadd.f32 %v3319_v50, %v1932_v58  ;;  %v1933_v5 = vmul.f32 %v2749_v59, %v3314_v4  ;;  %v2462_v15 = vcombine.low %v2045_v11, %v2045_v11  ;;  %v2463_v16 = vcombine.high %v2045_v11, %v2045_v11 }
 0x156   : > { %v1987_v0 = vor.u32 %v1985_v43, %v1984_v53  ;;  %v1991_v2 = vrot.slane %v1989_v56, 7  ;;  %v2641_v6 = vadd.f32 %v2640_v60, %v2639_v55  ;;  %v2739_v10 = vadd.f32 %v3307_v47, %v2638_v1 }
 0x157   : > { %v1955_v14 = vmax.f32 %v1947_v3, 0.0  ;;  %v2046_v47 = vsel %vm3342_vm8, %v2035_v17, 0  ;;  %2478 = vst [vmem:[%s2963_s26 + $0x8] sm:$0xf] %v2462_v15  ;;  %2479 = vst [vmem:[%s2963_s26 + $0xc] sm:$0x1] %v2463_v16  ;;  %v1948_v25 = vadd.f32 %v3319_v50, %v1933_v5 }
 0x158   : > { %v2036_v9 = vsel %vm3335_vm7, 0, %v1987_v0  ;;  %v1994_v13 = vor.u32 %v1992_v57, %v1991_v2  ;;  %v2464_v22 = vcombine.low %v2046_v47, %v2046_v47  ;;  %v2465_v23 = vcombine.high %v2046_v47, %v2046_v47 }
 0x159   : > { %v2047_v12 = vsel %vm3342_vm8, %v2036_v9, 0  ;;  %v1963_v21 = vpack.c.bf16 %v1955_v14, %v1955_v14  ;;  %v1956_v29 = vmax.f32 %v1948_v25, 0.0  ;;  %v2740_v30 = vadd.f32 %v2739_v10, %v3329_v33 }
 0x15a   : > { %v2466_v18 = vcombine.low %v2047_v12, %v2047_v12  ;;  %v2467_v19 = vcombine.high %v2047_v12, %v2047_v12  ;;  %v2037_v20 = vsel %vm3335_vm7, 0, %v1994_v13  ;;  %2480 = vst [vmem:[%s2963_s26 + $0x10] sm:$0xf] %v2464_v22  ;;  %2481 = vst [vmem:[%s2963_s26 + $0x14] sm:$0x1] %v2465_v23  ;;  %v2745_v31 = vadd.f32 %v3309_v49, %v2641_v6 }
 0x15b   : > { %v2048_v24 = vsel %vm3342_vm8, %v2037_v20, 0  ;;  %v1996_v28 = vshrl.u32 %v1963_v21, 16  ;;  %v1999_v34 = vshll.u32 %v1963_v21, 16  ;;  %v1964_v35 = vpack.c.bf16 %v1956_v29, %v1956_v29 }
 0x15c   : > { %2482 = vst [vmem:[%s2963_s26 + $0x18] sm:$0xf] %v2466_v18  ;;  %2483 = vst [vmem:[%s2963_s26 + $0x1c] sm:$0x1] %v2467_v19  ;;  %v2468_v26 = vcombine.low %v2048_v24, %v2048_v24  ;;  %v2469_v27 = vcombine.high %v2048_v24, %v2048_v24  ;;  %v1934_v36 = vmul.f32 %v2740_v30, %v3314_v4 }
 0x15d   : > { %v1998_v32 = vrot.slane %v1996_v28, 7  ;;  %v2746_v37 = vadd.f32 %v2745_v31, %v3331_v39  ;;  %v2003_v40 = vshrl.u32 %v1964_v35, 16  ;;  %v2006_v33 = vshll.u32 %v1964_v35, 16 }
 0x15e   : > { %2484 = vst [vmem:[%s2963_s26 + $0x20] sm:$0xf] %v2468_v26  ;;  %2485 = vst [vmem:[%s2963_s26 + $0x24] sm:$0x1] %v2469_v27  ;;  %v1949_v42 = vadd.f32 %v3319_v50, %v1934_v36 }
 0x15f   : > { %v2001_v38 = vor.u32 %v1999_v34, %v1998_v32  ;;  %v1935_v43 = vmul.f32 %v2746_v37, %v3314_v4  ;;  %v2005_v45 = vrot.slane %v2003_v40, 7 }
 0x160   : > { %v1957_v46 = vmax.f32 %v1949_v42, 0.0 }
 0x161   : > { %v2038_v49 = vsel %vm3335_vm7, 0, %v2001_v38  ;;  %v1950_v48 = vadd.f32 %v3319_v50, %v1935_v43  ;;  %v2008_v52 = vor.u32 %v2006_v33, %v2005_v45 }
 0x162   : > { %v2049_v44 = vsel %vm3342_vm8, %v2038_v49, 0  ;;  %v1965_v53 = vpack.c.bf16 %v1957_v46, %v1957_v46 }
 0x163   : > { %v2470_v39 = vcombine.low %v2049_v44, %v2049_v44  ;;  %v2471_v51 = vcombine.high %v2049_v44, %v2049_v44  ;;  %v1958_v54 = vmax.f32 %v1950_v48, 0.0  ;;  %v2039_v4 = vsel %vm3335_vm7, 0, %v2008_v52 }
 0x164   : > { %v2010_v55 = vshrl.u32 %v1965_v53, 16  ;;  %v2050_v57 = vsel %vm3342_vm8, %v2039_v4, 0  ;;  %v2013_v58 = vshll.u32 %v1965_v53, 16 }
 0x165   : > { %2486 = vst [vmem:[%s2963_s26 + $0x28] sm:$0xf] %v2470_v39  ;;  %2487 = vst [vmem:[%s2963_s26 + $0x2c] sm:$0x1] %v2471_v51  ;;  %v1966_v56 = vpack.c.bf16 %v1958_v54, %v1958_v54  ;;  %v2472_v59 = vcombine.low %v2050_v57, %v2050_v57  ;;  %v2473_v50 = vcombine.high %v2050_v57, %v2050_v57 }
 0x166   : > { %v2012_v60 = vrot.slane %v2010_v55, 7 }
 0x167   : > { %v2017_v61 = vshrl.u32 %v1966_v56, 16  ;;  %2488 = vst [vmem:[%s2963_s26 + $0x30] sm:$0xf] %v2472_v59  ;;  %2489 = vst [vmem:[%s2963_s26 + $0x34] sm:$0x1] %v2473_v50  ;;  %v2020_v1 = vshll.u32 %v1966_v56, 16 }
 0x168   : > { %v2015_v63 = vor.u32 %v2013_v58, %v2012_v60 }
 0x169   : > { %v2019_v0 = vrot.slane %v2017_v61, 7 }
 0x16a   : > { %v2040_v2 = vsel %vm3335_vm7, 0, %v2015_v63 }
 0x16b   : > { %v2022_v3 = vor.u32 %v2020_v1, %v2019_v0  ;;  %v2051_v5 = vsel %vm3342_vm8, %v2040_v2, 0 }
 0x16c   : > { %v2474_v6 = vcombine.low %v2051_v5, %v2051_v5  ;;  %v2475_v7 = vcombine.high %v2051_v5, %v2051_v5 }
 0x16d   : > { %v2041_v8 = vsel %vm3335_vm7, 0, %v2022_v3 }
 0x16e   : > { %v2052_v9 = vsel %vm3342_vm8, %v2041_v8, 0  ;;  %2490 = vst [vmem:[%s2963_s26 + $0x38] sm:$0xf] %v2474_v6  ;;  %2491 = vst [vmem:[%s2963_s26 + $0x3c] sm:$0x1] %v2475_v7 }
 0x16f   : > { %v2476_v10 = vcombine.low %v2052_v9, %v2052_v9  ;;  %v2477_v11 = vcombine.high %v2052_v9, %v2052_v9 }
 0x171   : > { %2492 = vst [vmem:[%s2963_s26 + $0x40] sm:$0xf] %v2476_v10  ;;  %2493 = vst [vmem:[%s2963_s26 + $0x44] sm:$0x1] %v2477_v11 }
 0x172 PF: > { %s17_s24 = sadd.s32 1, %s2879_s24  }
 0x173   : > { %p14_p4 = scmp.ge.s32.totalorder %s17_s24, 4  }
 0x175   :  { %16 = sbr.rel (!%p14_p4) target bundleno = 1 (0x1), region = 93 }

</bundles_post_ra>
